<compile_context>
chip_gen: v7x
topology: tpu7x:2x2x1
jax: 0.10.0
libtpu: 0.0.40
codegen_flags: <defaults>
</compile_context>

<pallas_src>
import functools

import jax
import jax.numpy as jnp
from jax.experimental import pallas as pl
from jax.experimental.pallas import tpu as pltpu

# ---- model config (ModelConfig defaults) -----------------------------------
E = 128            # encoder_hidden_size
H = 4              # num_attention_heads
DH = E // H        # head dim = 32
FF = 4 * E         # feed-forward hidden = 512
NUM_LAYERS = 2
MAX_SIZE_VALUE = 5100
NUM_TYPES = 2
LN_EPS = 1e-5


# ---- Pallas kernel: both transformer encoder layers fused -------------------
def _layernorm(x, gamma, beta):
    mu = jnp.mean(x, axis=-1, keepdims=True)
    xc = x - mu
    var = jnp.mean(xc * xc, axis=-1, keepdims=True)
    inv = jax.lax.rsqrt(var + LN_EPS)
    return xc * inv * gamma + beta


def fused_encoder_kernel(L, N, num_layers,
                         xl_ref, xs_ref, xt_ref, pe_ref, seg_ref,
                         wqkv_hbm, wo_hbm, w1_hbm, w2_hbm,
                         bqkv_ref, bo_ref, g1_ref, b1_ref, bf1_ref, bf2_ref,
                         g2_ref, b2_ref,
                         o_ref,
                         wqkv_buf, wo_buf, w1_buf, w2_buf, wsem):
    T = L * N

    # Kick off ALL weight DMAs immediately.  Layer 0's QKV weight is needed
    # almost right away; layer 0's wo/w1/w2 and all of layer 1 stream in
    # behind compute (manual P4-style prefetch -- the per-call cost on
    # v5e/v6e is dominated by this ~0.77 MiB of weight traffic).
    copies = []
    for li in range(num_layers):
        layer_copies = (
            pltpu.make_async_copy(wqkv_hbm.at[li], wqkv_buf.at[li], wsem.at[li, 0]),
            pltpu.make_async_copy(wo_hbm.at[li],   wo_buf.at[li],   wsem.at[li, 1]),
            pltpu.make_async_copy(w1_hbm.at[li],   w1_buf.at[li],   wsem.at[li, 2]),
            pltpu.make_async_copy(w2_hbm.at[li],   w2_buf.at[li],   wsem.at[li, 3]),
        )
        for cp in layer_copies:
            cp.start()
        copies.append(layer_copies)

    # Embedding sum + positional encoding (VPU work, overlaps the weight DMA).
    # xl/xs/xt: (L, N, E); pe: (N, E) broadcast across the sequence axis.
    x = xl_ref[...] + xs_ref[...] + xt_ref[...] + pe_ref[...][None, :, :]
    x = x.reshape(T, E)

    seg = seg_ref[...]   # (E, E) bf16 block-diagonal head-segment matrix

    for li in range(num_layers):
        bqkv = bqkv_ref[li]           # (1, 3E) f32, 1/sqrt(DH) folded into Q part
        bo = bo_ref[li]               # (1, E)  f32
        g1 = g1_ref[li]; b1 = b1_ref[li]
        bf1 = bf1_ref[li]; bf2 = bf2_ref[li]
        g2 = g2_ref[li]; b2 = b2_ref[li]

        # fused QKV projection on the MXU (bf16 operands, f32 accumulation)
        copies[li][0].wait()          # wqkv[li] ready
        qkv = jnp.dot(x.astype(jnp.bfloat16), wqkv_buf[li],
                      preferred_element_type=jnp.float32) + bqkv
        q = qkv[:, 0 * E:1 * E]       # (T, E); 1/sqrt(DH) already folded in
        k = qkv[:, 1 * E:2 * E]
        v = qkv[:, 2 * E:3 * E]

        # All L*L (query-step, key-step) score blocks in ONE MXU push:
        #   prod[(l*L+m)*N + n, :] = q[l,n,:] * k[m,n,:]
        # dot with `seg` broadcasts each head's score across its 32 lanes.
        prod = (q.reshape(L, 1, N, E) * k.reshape(1, L, N, E)).reshape(L * L * N, E)
        s = jnp.dot(prod.astype(jnp.bfloat16), seg,
                    preferred_element_type=jnp.float32).reshape(L, L, N, E)

        # softmax over the key-step axis (m) -- full lane width, pure VPU/EUP.
        mx = jnp.max(s, axis=1, keepdims=True)
        e = jnp.exp(s - mx)
        denom = jnp.sum(e, axis=1, keepdims=True)
        p = e * pl.reciprocal(denom, approx=True)
        ctx = jnp.sum(p * v.reshape(1, L, N, E), axis=1).reshape(T, E)

        copies[li][1].wait()          # wo[li] ready
        attn = jnp.dot(ctx.astype(jnp.bfloat16), wo_buf[li],
                       preferred_element_type=jnp.float32) + bo
        # TODO(synk): dropout omitted — forward reproduced in eval mode (identity).
        y1 = _layernorm(x + attn, g1, b1)

        copies[li][2].wait()          # w1[li] ready
        hid = jnp.dot(y1.astype(jnp.bfloat16), w1_buf[li],
                      preferred_element_type=jnp.float32) + bf1
        hid = jnp.maximum(hid, 0.0)   # ReLU

        copies[li][3].wait()          # w2[li] ready
        ff = jnp.dot(hid.astype(jnp.bfloat16), w2_buf[li],
                     preferred_element_type=jnp.float32) + bf2
        x = _layernorm(y1 + ff, g2, b2)

    o_ref[...] = x.reshape(L, N, E)


def fused_encoder_pallas(emb_l, emb_s, emb_t, pe_n, kp, L, N, num_layers):
    kernel = functools.partial(fused_encoder_kernel, L, N, num_layers)
    vmem = pl.BlockSpec(memory_space=pltpu.MemorySpace.VMEM)
    hbm = pl.BlockSpec(memory_space=pl.ANY)    # big weights stay in HBM, DMA'd manually
    return pl.pallas_call(
        kernel,
        out_shape=jax.ShapeDtypeStruct((L, N, E), jnp.float32),
        in_specs=[vmem, vmem, vmem, vmem, vmem,      # emb_l, emb_s, emb_t, pe, seg
                  hbm, hbm, hbm, hbm,                # wqkv, wo, w1, w2 (HBM)
                  vmem, vmem, vmem, vmem, vmem, vmem, vmem, vmem],  # biases + LN
        out_specs=vmem,
        scratch_shapes=[
            pltpu.VMEM((num_layers, E, 3 * E), jnp.bfloat16),   # wqkv buffers
            pltpu.VMEM((num_layers, E, E), jnp.bfloat16),       # wo buffers
            pltpu.VMEM((num_layers, E, FF), jnp.bfloat16),      # w1 buffers
            pltpu.VMEM((num_layers, FF, E), jnp.bfloat16),      # w2 buffers
            pltpu.SemaphoreType.DMA((num_layers, 4)),
        ],
        cost_estimate=pl.CostEstimate(flops=27_000_000, transcendentals=8_192,
                                      bytes_accessed=850_000),
    )(emb_l, emb_s, emb_t, pe_n, kp["seg"],
      kp["wqkv"], kp["wo"], kp["w1"], kp["w2"],
      kp["bqkv"], kp["bo"], kp["g1"], kp["b1"], kp["bf1"], kp["bf2"],
      kp["g2"], kp["b2"])


# ---- plain-JAX glue: params, embeddings, positional encoding ----------------
def positional_encoding_table(hidden, max_length=5000):
    position = jnp.arange(max_length, dtype=jnp.float32)[:, None]
    div_term = jnp.exp(jnp.arange(0, hidden, 2, dtype=jnp.float32)
                       * (-jnp.log(jnp.float32(10000.0)) / hidden))
    pe = jnp.zeros((max_length, hidden), jnp.float32)
    pe = pe.at[:, 0::2].set(jnp.sin(position * div_term))
    pe = pe.at[:, 1::2].set(jnp.cos(position * div_term))
    return pe[None]  # (1, max_length, hidden)


def init_params(key):
    def nrm(k, shape, s=0.02):
        return jax.random.normal(k, shape, jnp.float32) * s

    keys = jax.random.split(key, 3 + NUM_LAYERS * 8)
    params = {
        "left": nrm(keys[0], (MAX_SIZE_VALUE + 1, E)),
        "size": nrm(keys[1], (MAX_SIZE_VALUE + 1, E)),
        "type": nrm(keys[2], (NUM_TYPES, E)),
        "pe": positional_encoding_table(E),
        "layers": [],
    }
    for li in range(NUM_LAYERS):
        k = keys[3 + li * 8: 3 + (li + 1) * 8]
        params["layers"].append({
            "wqkv": nrm(k[0], (3 * E, E)),   # in_proj_weight
            "bqkv": nrm(k[1], (3 * E,)),
            "wo": nrm(k[2], (E, E)),         # out_proj
            "bo": nrm(k[3], (E,)),
            "g1": jnp.ones((E,), jnp.float32),
            "b1": jnp.zeros((E,), jnp.float32),
            "w1": nrm(k[4], (FF, E)),        # Linear(E, 4E)
            "bf1": nrm(k[5], (FF,)),
            "w2": nrm(k[6], (E, FF)),        # Linear(4E, E)
            "bf2": nrm(k[7], (E,)),
            "g2": jnp.ones((E,), jnp.float32),
            "b2": jnp.zeros((E,), jnp.float32),
        })
    return params


def prepare_kernel_params(params):
    """One-time transform to kernel layout: stack layers, pre-transpose,
    fold the 1/sqrt(DH) query scale into in_proj, cast matmul weights to bf16,
    reshape biases/LN params to (1, X), and prebuild the bf16 head-segment
    (block-diagonal) matrix used by the batched score matmul."""
    scale = 1.0 / float(DH) ** 0.5

    def stack(fn):
        return jnp.stack([fn(lp) for lp in params["layers"]], axis=0)

    def wqkv_t(lp):
        w = lp["wqkv"].T                       # (E, 3E)
        w = w.at[:, :E].multiply(scale)        # fold scale into Q columns
        return w.astype(jnp.bfloat16)

    def bqkv(lp):
        b = lp["bqkv"].at[:E].multiply(scale)  # fold scale into Q bias
        return b[None, :].astype(jnp.float32)

    row = jnp.arange(E, dtype=jnp.int32)[:, None] // DH
    col = jnp.arange(E, dtype=jnp.int32)[None, :] // DH
    seg = (row == col).astype(jnp.bfloat16)    # (E, E) block-diagonal, bf16

    return {
        "seg":  seg,
        "wqkv": stack(wqkv_t),                                       # (2, E, 3E) bf16
        "bqkv": stack(bqkv),                                         # (2, 1, 3E) f32
        "wo":   stack(lambda lp: lp["wo"].T.astype(jnp.bfloat16)),   # (2, E, E)  bf16
        "bo":   stack(lambda lp: lp["bo"][None, :]),                 # (2, 1, E)  f32
        "g1":   stack(lambda lp: lp["g1"][None, :]),
        "b1":   stack(lambda lp: lp["b1"][None, :]),
        "w1":   stack(lambda lp: lp["w1"].T.astype(jnp.bfloat16)),   # (2, E, FF) bf16
        "bf1":  stack(lambda lp: lp["bf1"][None, :]),                # (2, 1, FF) f32
        "w2":   stack(lambda lp: lp["w2"].T.astype(jnp.bfloat16)),   # (2, FF, E) bf16
        "bf2":  stack(lambda lp: lp["bf2"][None, :]),                # (2, 1, E)  f32
        "g2":   stack(lambda lp: lp["g2"][None, :]),
        "b2":   stack(lambda lp: lp["b2"][None, :]),
    }


def transformer_encoder(params, kparams, inputs_left_space, inputs_size, inputs_type):
    L, N = inputs_left_space.shape            # D0 -> seq (L), D1 -> batch (N)
    # seg-trick / slicing relies on sublane/lane alignment:
    assert N % 8 == 0, "D1 (attention batch) must be a multiple of 8"
    assert E % 128 == 0 and E // H == DH
    emb_l = params["left"][inputs_left_space]  # (L, N, E) gathers stay in XLA
    emb_s = params["size"][inputs_size]
    emb_t = params["type"][inputs_type]
    pe_n = params["pe"][0, :N, :]              # PE is added along D1
    return fused_encoder_pallas(emb_l, emb_s, emb_t, pe_n, kparams, L, N, NUM_LAYERS)


# ---- pure-JAX reference (f32, original weights) for a correctness check -----
def _ref_ln(x, g, b):
    mu = jnp.mean(x, axis=-1, keepdims=True)
    var = jnp.mean((x - mu) ** 2, axis=-1, keepdims=True)
    return (x - mu) * jax.lax.rsqrt(var + LN_EPS) * g + b


def _ref_layer(x, lp):
    L, N, _ = x.shape
    qkv = jnp.einsum("lne,fe->lnf", x, lp["wqkv"]) + lp["bqkv"]
    q, k, v = jnp.split(qkv, 3, axis=-1)
    q = q.reshape(L, N, H, DH) / float(DH) ** 0.5
    k = k.reshape(L, N, H, DH)
    v = v.reshape(L, N, H, DH)
    s = jnp.einsum("lnhd,mnhd->nhlm", q, k)
    p = jax.nn.softmax(s, axis=-1)
    ctx = jnp.einsum("nhlm,mnhd->lnhd", p, v).reshape(L, N, E)
    attn = jnp.einsum("lne,fe->lnf", ctx, lp["wo"]) + lp["bo"]
    y1 = _ref_ln(x + attn, lp["g1"], lp["b1"])
    h = jnp.maximum(jnp.einsum("lne,fe->lnf", y1, lp["w1"]) + lp["bf1"], 0.0)
    ff = jnp.einsum("lnf,ef->lne", h, lp["w2"]) + lp["bf2"]
    return _ref_ln(y1 + ff, lp["g2"], lp["b2"])


def transformer_encoder_ref(params, left, size, typ):
    emb = params["left"][left] + params["size"][size] + params["type"][typ]
    x = emb + params["pe"][:, :emb.shape[1], :]
    for lp in params["layers"]:
        x = _ref_layer(x, lp)
    return x


# ---- main --------------------------------------------------------------------
if __name__ == "__main__":
    key = jax.random.PRNGKey(0)
    pkey, k1, k2, k3 = jax.random.split(key, 4)
    params = init_params(pkey)
    kparams = prepare_kernel_params(params)   # one-time param transform

    D0, D1 = 2, 8  # small shapes: (D0, D1) integer token grids
    inputs_left_space = jax.random.randint(k1, (D0, D1), 0, MAX_SIZE_VALUE + 1, jnp.int32)
    inputs_size = jax.random.randint(k2, (D0, D1), 0, MAX_SIZE_VALUE + 1, jnp.int32)
    inputs_type = jax.random.randint(k3, (D0, D1), 0, NUM_TYPES, jnp.int32)

    out = transformer_encoder(params, kparams, inputs_left_space, inputs_size, inputs_type)
    out = jax.block_until_ready(out)

    ref = transformer_encoder_ref(params, inputs_left_space, inputs_size, inputs_type)
    ref = jax.block_until_ready(ref)

    assert out.shape == (D0, D1, E) and out.dtype == jnp.float32
    # Kernel runs matmuls (incl. the score matmul) with bf16 operands and f32
    # accumulation; reference is pure f32, so tolerance is bf16-sized.
    max_err = float(jnp.abs(out - ref).max())
    assert jnp.allclose(out, ref, atol=5e-2, rtol=5e-2), max_err

    print("KERNEL_OK")
</pallas_src>

<mosaic_0001>
module attributes {stable_mosaic.version = 11 : i64} {
  func.func @fused_encoder_kernel(%arg0: memref<2x8x128xf32, #tpu.memory_space<vmem>>, %arg1: memref<2x8x128xf32, #tpu.memory_space<vmem>>, %arg2: memref<2x8x128xf32, #tpu.memory_space<vmem>>, %arg3: memref<8x128xf32, #tpu.memory_space<vmem>>, %arg4: memref<128x128xbf16, #tpu.memory_space<vmem>>, %arg5: memref<2x128x384xbf16, #tpu.memory_space<any>>, %arg6: memref<2x128x128xbf16, #tpu.memory_space<any>>, %arg7: memref<2x128x512xbf16, #tpu.memory_space<any>>, %arg8: memref<2x512x128xbf16, #tpu.memory_space<any>>, %arg9: memref<2x1x384xf32, #tpu.memory_space<vmem>>, %arg10: memref<2x1x128xf32, #tpu.memory_space<vmem>>, %arg11: memref<2x1x128xf32, #tpu.memory_space<vmem>>, %arg12: memref<2x1x128xf32, #tpu.memory_space<vmem>>, %arg13: memref<2x1x512xf32, #tpu.memory_space<vmem>>, %arg14: memref<2x1x128xf32, #tpu.memory_space<vmem>>, %arg15: memref<2x1x128xf32, #tpu.memory_space<vmem>>, %arg16: memref<2x1x128xf32, #tpu.memory_space<vmem>>, %arg17: memref<2x8x128xf32, #tpu.memory_space<vmem>>, %arg18: memref<2x128x384xbf16, #tpu.memory_space<vmem>>, %arg19: memref<2x128x128xbf16, #tpu.memory_space<vmem>>, %arg20: memref<2x128x512xbf16, #tpu.memory_space<vmem>>, %arg21: memref<2x512x128xbf16, #tpu.memory_space<vmem>>, %arg22: memref<2x4x!tpu.dma_semaphore, #tpu.memory_space<semaphore_mem>>) attributes {dimension_semantics = [], scalar_prefetch = 0 : i64, scratch_operands = 5 : i64, tpu.core_type = #tpu.core_type<tc>} {
    %c0_i32 = arith.constant 0 : i32
    %c0_i32_0 = arith.constant 0 : i32
    %c0_i32_1 = arith.constant 0 : i32
    %c0_i32_2 = arith.constant 0 : i32
    %c0_i32_3 = arith.constant 0 : i32
    %c0_i32_4 = arith.constant 0 : i32
    %0 = tpu.memref_slice %arg5[%c0_i32, %c0_i32_3, %c0_i32_4] : memref<2x128x384xbf16, #tpu.memory_space<any>> -> memref<1x128x384xbf16, #tpu.memory_space<any>>
    %1 = tpu.memref_squeeze %0 : memref<1x128x384xbf16, #tpu.memory_space<any>> -> memref<128x384xbf16, #tpu.memory_space<any>>
    %c0_i32_5 = arith.constant 0 : i32
    %c0_i32_6 = arith.constant 0 : i32
    %2 = tpu.memref_slice %arg18[%c0_i32_0, %c0_i32_5, %c0_i32_6] : memref<2x128x384xbf16, #tpu.memory_space<vmem>> -> memref<1x128x384xbf16, #tpu.memory_space<vmem>>
    %3 = tpu.memref_squeeze %2 : memref<1x128x384xbf16, #tpu.memory_space<vmem>> -> memref<128x384xbf16, #tpu.memory_space<vmem>>
    %4 = tpu.memref_slice %arg22[%c0_i32_1, %c0_i32_2] : memref<2x4x!tpu.dma_semaphore, #tpu.memory_space<semaphore_mem>> -> memref<1x1x!tpu.dma_semaphore, #tpu.memory_space<semaphore_mem>>
    %5 = tpu.memref_squeeze %4 : memref<1x1x!tpu.dma_semaphore, #tpu.memory_space<semaphore_mem>> -> memref<!tpu.dma_semaphore, #tpu.memory_space<semaphore_mem>>
    tpu.enqueue_dma source(%1 : memref<128x384xbf16, #tpu.memory_space<any>>) target(%3 : memref<128x384xbf16, #tpu.memory_space<vmem>>) target_semaphore(%5 : memref<!tpu.dma_semaphore, #tpu.memory_space<semaphore_mem>>)
    %c0_i32_7 = arith.constant 0 : i32
    %c0_i32_8 = arith.constant 0 : i32
    %c0_i32_9 = arith.constant 0 : i32
    %c1_i32 = arith.constant 1 : i32
    %c0_i32_10 = arith.constant 0 : i32
    %c0_i32_11 = arith.constant 0 : i32
    %6 = tpu.memref_slice %arg6[%c0_i32_7, %c0_i32_10, %c0_i32_11] : memref<2x128x128xbf16, #tpu.memory_space<any>> -> memref<1x128x128xbf16, #tpu.memory_space<any>>
    %7 = tpu.memref_squeeze %6 : memref<1x128x128xbf16, #tpu.memory_space<any>> -> memref<128x128xbf16, #tpu.memory_space<any>>
    %c0_i32_12 = arith.constant 0 : i32
    %c0_i32_13 = arith.constant 0 : i32
    %8 = tpu.memref_slice %arg19[%c0_i32_8, %c0_i32_12, %c0_i32_13] : memref<2x128x128xbf16, #tpu.memory_space<vmem>> -> memref<1x128x128xbf16, #tpu.memory_space<vmem>>
    %9 = tpu.memref_squeeze %8 : memref<1x128x128xbf16, #tpu.memory_space<vmem>> -> memref<128x128xbf16, #tpu.memory_space<vmem>>
    %10 = tpu.memref_slice %arg22[%c0_i32_9, %c1_i32] : memref<2x4x!tpu.dma_semaphore, #tpu.memory_space<semaphore_mem>> -> memref<1x1x!tpu.dma_semaphore, #tpu.memory_space<semaphore_mem>>
    %11 = tpu.memref_squeeze %10 : memref<1x1x!tpu.dma_semaphore, #tpu.memory_space<semaphore_mem>> -> memref<!tpu.dma_semaphore, #tpu.memory_space<semaphore_mem>>
    tpu.enqueue_dma source(%7 : memref<128x128xbf16, #tpu.memory_space<any>>) target(%9 : memref<128x128xbf16, #tpu.memory_space<vmem>>) target_semaphore(%11 : memref<!tpu.dma_semaphore, #tpu.memory_space<semaphore_mem>>)
    %c0_i32_14 = arith.constant 0 : i32
    %c0_i32_15 = arith.constant 0 : i32
    %c0_i32_16 = arith.constant 0 : i32
    %c2_i32 = arith.constant 2 : i32
    %c0_i32_17 = arith.constant 0 : i32
    %c0_i32_18 = arith.constant 0 : i32
    %12 = tpu.memref_slice %arg7[%c0_i32_14, %c0_i32_17, %c0_i32_18] : memref<2x128x512xbf16, #tpu.memory_space<any>> -> memref<1x128x512xbf16, #tpu.memory_space<any>>
    %13 = tpu.memref_squeeze %12 : memref<1x128x512xbf16, #tpu.memory_space<any>> -> memref<128x512xbf16, #tpu.memory_space<any>>
    %c0_i32_19 = arith.constant 0 : i32
    %c0_i32_20 = arith.constant 0 : i32
    %14 = tpu.memref_slice %arg20[%c0_i32_15, %c0_i32_19, %c0_i32_20] : memref<2x128x512xbf16, #tpu.memory_space<vmem>> -> memref<1x128x512xbf16, #tpu.memory_space<vmem>>
    %15 = tpu.memref_squeeze %14 : memref<1x128x512xbf16, #tpu.memory_space<vmem>> -> memref<128x512xbf16, #tpu.memory_space<vmem>>
    %16 = tpu.memref_slice %arg22[%c0_i32_16, %c2_i32] : memref<2x4x!tpu.dma_semaphore, #tpu.memory_space<semaphore_mem>> -> memref<1x1x!tpu.dma_semaphore, #tpu.memory_space<semaphore_mem>>
    %17 = tpu.memref_squeeze %16 : memref<1x1x!tpu.dma_semaphore, #tpu.memory_space<semaphore_mem>> -> memref<!tpu.dma_semaphore, #tpu.memory_space<semaphore_mem>>
    tpu.enqueue_dma source(%13 : memref<128x512xbf16, #tpu.memory_space<any>>) target(%15 : memref<128x512xbf16, #tpu.memory_space<vmem>>) target_semaphore(%17 : memref<!tpu.dma_semaphore, #tpu.memory_space<semaphore_mem>>)
    %c0_i32_21 = arith.constant 0 : i32
    %c0_i32_22 = arith.constant 0 : i32
    %c0_i32_23 = arith.constant 0 : i32
    %c3_i32 = arith.constant 3 : i32
    %c0_i32_24 = arith.constant 0 : i32
    %c0_i32_25 = arith.constant 0 : i32
    %18 = tpu.memref_slice %arg8[%c0_i32_21, %c0_i32_24, %c0_i32_25] : memref<2x512x128xbf16, #tpu.memory_space<any>> -> memref<1x512x128xbf16, #tpu.memory_space<any>>
    %19 = tpu.memref_squeeze %18 : memref<1x512x128xbf16, #tpu.memory_space<any>> -> memref<512x128xbf16, #tpu.memory_space<any>>
    %c0_i32_26 = arith.constant 0 : i32
    %c0_i32_27 = arith.constant 0 : i32
    %20 = tpu.memref_slice %arg21[%c0_i32_22, %c0_i32_26, %c0_i32_27] : memref<2x512x128xbf16, #tpu.memory_space<vmem>> -> memref<1x512x128xbf16, #tpu.memory_space<vmem>>
    %21 = tpu.memref_squeeze %20 : memref<1x512x128xbf16, #tpu.memory_space<vmem>> -> memref<512x128xbf16, #tpu.memory_space<vmem>>
    %22 = tpu.memref_slice %arg22[%c0_i32_23, %c3_i32] : memref<2x4x!tpu.dma_semaphore, #tpu.memory_space<semaphore_mem>> -> memref<1x1x!tpu.dma_semaphore, #tpu.memory_space<semaphore_mem>>
    %23 = tpu.memref_squeeze %22 : memref<1x1x!tpu.dma_semaphore, #tpu.memory_space<semaphore_mem>> -> memref<!tpu.dma_semaphore, #tpu.memory_space<semaphore_mem>>
    tpu.enqueue_dma source(%19 : memref<512x128xbf16, #tpu.memory_space<any>>) target(%21 : memref<512x128xbf16, #tpu.memory_space<vmem>>) target_semaphore(%23 : memref<!tpu.dma_semaphore, #tpu.memory_space<semaphore_mem>>)
    %c1_i32_28 = arith.constant 1 : i32
    %c1_i32_29 = arith.constant 1 : i32
    %c1_i32_30 = arith.constant 1 : i32
    %c0_i32_31 = arith.constant 0 : i32
    %c0_i32_32 = arith.constant 0 : i32
    %c0_i32_33 = arith.constant 0 : i32
    %24 = tpu.memref_slice %arg5[%c1_i32_28, %c0_i32_32, %c0_i32_33] : memref<2x128x384xbf16, #tpu.memory_space<any>> -> memref<1x128x384xbf16, #tpu.memory_space<any>>
    %25 = tpu.memref_squeeze %24 : memref<1x128x384xbf16, #tpu.memory_space<any>> -> memref<128x384xbf16, #tpu.memory_space<any>>
    %c0_i32_34 = arith.constant 0 : i32
    %c0_i32_35 = arith.constant 0 : i32
    %26 = tpu.memref_slice %arg18[%c1_i32_29, %c0_i32_34, %c0_i32_35] : memref<2x128x384xbf16, #tpu.memory_space<vmem>> -> memref<1x128x384xbf16, #tpu.memory_space<vmem>>
    %27 = tpu.memref_squeeze %26 : memref<1x128x384xbf16, #tpu.memory_space<vmem>> -> memref<128x384xbf16, #tpu.memory_space<vmem>>
    %28 = tpu.memref_slice %arg22[%c1_i32_30, %c0_i32_31] : memref<2x4x!tpu.dma_semaphore, #tpu.memory_space<semaphore_mem>> -> memref<1x1x!tpu.dma_semaphore, #tpu.memory_space<semaphore_mem>>
    %29 = tpu.memref_squeeze %28 : memref<1x1x!tpu.dma_semaphore, #tpu.memory_space<semaphore_mem>> -> memref<!tpu.dma_semaphore, #tpu.memory_space<semaphore_mem>>
    tpu.enqueue_dma source(%25 : memref<128x384xbf16, #tpu.memory_space<any>>) target(%27 : memref<128x384xbf16, #tpu.memory_space<vmem>>) target_semaphore(%29 : memref<!tpu.dma_semaphore, #tpu.memory_space<semaphore_mem>>)
    %c1_i32_36 = arith.constant 1 : i32
    %c1_i32_37 = arith.constant 1 : i32
    %c1_i32_38 = arith.constant 1 : i32
    %c1_i32_39 = arith.constant 1 : i32
    %c0_i32_40 = arith.constant 0 : i32
    %c0_i32_41 = arith.constant 0 : i32
    %30 = tpu.memref_slice %arg6[%c1_i32_36, %c0_i32_40, %c0_i32_41] : memref<2x128x128xbf16, #tpu.memory_space<any>> -> memref<1x128x128xbf16, #tpu.memory_space<any>>
    %31 = tpu.memref_squeeze %30 : memref<1x128x128xbf16, #tpu.memory_space<any>> -> memref<128x128xbf16, #tpu.memory_space<any>>
    %c0_i32_42 = arith.constant 0 : i32
    %c0_i32_43 = arith.constant 0 : i32
    %32 = tpu.memref_slice %arg19[%c1_i32_37, %c0_i32_42, %c0_i32_43] : memref<2x128x128xbf16, #tpu.memory_space<vmem>> -> memref<1x128x128xbf16, #tpu.memory_space<vmem>>
    %33 = tpu.memref_squeeze %32 : memref<1x128x128xbf16, #tpu.memory_space<vmem>> -> memref<128x128xbf16, #tpu.memory_space<vmem>>
    %34 = tpu.memref_slice %arg22[%c1_i32_38, %c1_i32_39] : memref<2x4x!tpu.dma_semaphore, #tpu.memory_space<semaphore_mem>> -> memref<1x1x!tpu.dma_semaphore, #tpu.memory_space<semaphore_mem>>
    %35 = tpu.memref_squeeze %34 : memref<1x1x!tpu.dma_semaphore, #tpu.memory_space<semaphore_mem>> -> memref<!tpu.dma_semaphore, #tpu.memory_space<semaphore_mem>>
    tpu.enqueue_dma source(%31 : memref<128x128xbf16, #tpu.memory_space<any>>) target(%33 : memref<128x128xbf16, #tpu.memory_space<vmem>>) target_semaphore(%35 : memref<!tpu.dma_semaphore, #tpu.memory_space<semaphore_mem>>)
    %c1_i32_44 = arith.constant 1 : i32
    %c1_i32_45 = arith.constant 1 : i32
    %c1_i32_46 = arith.constant 1 : i32
    %c2_i32_47 = arith.constant 2 : i32
    %c0_i32_48 = arith.constant 0 : i32
    %c0_i32_49 = arith.constant 0 : i32
    %36 = tpu.memref_slice %arg7[%c1_i32_44, %c0_i32_48, %c0_i32_49] : memref<2x128x512xbf16, #tpu.memory_space<any>> -> memref<1x128x512xbf16, #tpu.memory_space<any>>
    %37 = tpu.memref_squeeze %36 : memref<1x128x512xbf16, #tpu.memory_space<any>> -> memref<128x512xbf16, #tpu.memory_space<any>>
    %c0_i32_50 = arith.constant 0 : i32
    %c0_i32_51 = arith.constant 0 : i32
    %38 = tpu.memref_slice %arg20[%c1_i32_45, %c0_i32_50, %c0_i32_51] : memref<2x128x512xbf16, #tpu.memory_space<vmem>> -> memref<1x128x512xbf16, #tpu.memory_space<vmem>>
    %39 = tpu.memref_squeeze %38 : memref<1x128x512xbf16, #tpu.memory_space<vmem>> -> memref<128x512xbf16, #tpu.memory_space<vmem>>
    %40 = tpu.memref_slice %arg22[%c1_i32_46, %c2_i32_47] : memref<2x4x!tpu.dma_semaphore, #tpu.memory_space<semaphore_mem>> -> memref<1x1x!tpu.dma_semaphore, #tpu.memory_space<semaphore_mem>>
    %41 = tpu.memref_squeeze %40 : memref<1x1x!tpu.dma_semaphore, #tpu.memory_space<semaphore_mem>> -> memref<!tpu.dma_semaphore, #tpu.memory_space<semaphore_mem>>
    tpu.enqueue_dma source(%37 : memref<128x512xbf16, #tpu.memory_space<any>>) target(%39 : memref<128x512xbf16, #tpu.memory_space<vmem>>) target_semaphore(%41 : memref<!tpu.dma_semaphore, #tpu.memory_space<semaphore_mem>>)
    %c1_i32_52 = arith.constant 1 : i32
    %c1_i32_53 = arith.constant 1 : i32
    %c1_i32_54 = arith.constant 1 : i32
    %c3_i32_55 = arith.constant 3 : i32
    %c0_i32_56 = arith.constant 0 : i32
    %c0_i32_57 = arith.constant 0 : i32
    %42 = tpu.memref_slice %arg8[%c1_i32_52, %c0_i32_56, %c0_i32_57] : memref<2x512x128xbf16, #tpu.memory_space<any>> -> memref<1x512x128xbf16, #tpu.memory_space<any>>
    %43 = tpu.memref_squeeze %42 : memref<1x512x128xbf16, #tpu.memory_space<any>> -> memref<512x128xbf16, #tpu.memory_space<any>>
    %c0_i32_58 = arith.constant 0 : i32
    %c0_i32_59 = arith.constant 0 : i32
    %44 = tpu.memref_slice %arg21[%c1_i32_53, %c0_i32_58, %c0_i32_59] : memref<2x512x128xbf16, #tpu.memory_space<vmem>> -> memref<1x512x128xbf16, #tpu.memory_space<vmem>>
    %45 = tpu.memref_squeeze %44 : memref<1x512x128xbf16, #tpu.memory_space<vmem>> -> memref<512x128xbf16, #tpu.memory_space<vmem>>
    %46 = tpu.memref_slice %arg22[%c1_i32_54, %c3_i32_55] : memref<2x4x!tpu.dma_semaphore, #tpu.memory_space<semaphore_mem>> -> memref<1x1x!tpu.dma_semaphore, #tpu.memory_space<semaphore_mem>>
    %47 = tpu.memref_squeeze %46 : memref<1x1x!tpu.dma_semaphore, #tpu.memory_space<semaphore_mem>> -> memref<!tpu.dma_semaphore, #tpu.memory_space<semaphore_mem>>
    tpu.enqueue_dma source(%43 : memref<512x128xbf16, #tpu.memory_space<any>>) target(%45 : memref<512x128xbf16, #tpu.memory_space<vmem>>) target_semaphore(%47 : memref<!tpu.dma_semaphore, #tpu.memory_space<semaphore_mem>>)
    %c0 = arith.constant 0 : index
    %c0_60 = arith.constant 0 : index
    %c0_61 = arith.constant 0 : index
    %48 = vector.load %arg0[%c0, %c0_60, %c0_61] : memref<2x8x128xf32, #tpu.memory_space<vmem>>, vector<2x8x128xf32>
    %c0_62 = arith.constant 0 : index
    %c0_63 = arith.constant 0 : index
    %c0_64 = arith.constant 0 : index
    %49 = vector.load %arg1[%c0_62, %c0_63, %c0_64] : memref<2x8x128xf32, #tpu.memory_space<vmem>>, vector<2x8x128xf32>
    %50 = arith.addf %48, %49 : vector<2x8x128xf32>
    %c0_65 = arith.constant 0 : index
    %c0_66 = arith.constant 0 : index
    %c0_67 = arith.constant 0 : index
    %51 = vector.load %arg2[%c0_65, %c0_66, %c0_67] : memref<2x8x128xf32, #tpu.memory_space<vmem>>, vector<2x8x128xf32>
    %52 = arith.addf %50, %51 : vector<2x8x128xf32>
    %c0_68 = arith.constant 0 : index
    %c0_69 = arith.constant 0 : index
    %53 = vector.load %arg3[%c0_68, %c0_69] : memref<8x128xf32, #tpu.memory_space<vmem>>, vector<8x128xf32>
    %54 = vector.shape_cast %53 : vector<8x128xf32> to vector<1x8x128xf32>
    %55 = vector.broadcast %54 : vector<1x8x128xf32> to vector<2x8x128xf32>
    %56 = arith.addf %52, %55 : vector<2x8x128xf32>
    %57 = vector.shape_cast %56 : vector<2x8x128xf32> to vector<16x128xf32>
    %c0_70 = arith.constant 0 : index
    %c0_71 = arith.constant 0 : index
    %58 = vector.load %arg4[%c0_70, %c0_71] : memref<128x128xbf16, #tpu.memory_space<vmem>>, vector<128x128xbf16>
    %c0_72 = arith.constant 0 : index
    %c0_73 = arith.constant 0 : index
    %c0_74 = arith.constant 0 : index
    %59 = vector.load %arg9[%c0_72, %c0_73, %c0_74] : memref<2x1x384xf32, #tpu.memory_space<vmem>>, vector<1x1x384xf32>
    %60 = vector.shape_cast %59 : vector<1x1x384xf32> to vector<1x384xf32>
    %c0_75 = arith.constant 0 : index
    %c0_76 = arith.constant 0 : index
    %c0_77 = arith.constant 0 : index
    %61 = vector.load %arg10[%c0_75, %c0_76, %c0_77] : memref<2x1x128xf32, #tpu.memory_space<vmem>>, vector<1x1x128xf32>
    %62 = vector.shape_cast %61 : vector<1x1x128xf32> to vector<1x128xf32>
    %c0_78 = arith.constant 0 : index
    %c0_79 = arith.constant 0 : index
    %c0_80 = arith.constant 0 : index
    %63 = vector.load %arg11[%c0_78, %c0_79, %c0_80] : memref<2x1x128xf32, #tpu.memory_space<vmem>>, vector<1x1x128xf32>
    %64 = vector.shape_cast %63 : vector<1x1x128xf32> to vector<1x128xf32>
    %c0_81 = arith.constant 0 : index
    %c0_82 = arith.constant 0 : index
    %c0_83 = arith.constant 0 : index
    %65 = vector.load %arg12[%c0_81, %c0_82, %c0_83] : memref<2x1x128xf32, #tpu.memory_space<vmem>>, vector<1x1x128xf32>
    %66 = vector.shape_cast %65 : vector<1x1x128xf32> to vector<1x128xf32>
    %c0_84 = arith.constant 0 : index
    %c0_85 = arith.constant 0 : index
    %c0_86 = arith.constant 0 : index
    %67 = vector.load %arg13[%c0_84, %c0_85, %c0_86] : memref<2x1x512xf32, #tpu.memory_space<vmem>>, vector<1x1x512xf32>
    %68 = vector.shape_cast %67 : vector<1x1x512xf32> to vector<1x512xf32>
    %c0_87 = arith.constant 0 : index
    %c0_88 = arith.constant 0 : index
    %c0_89 = arith.constant 0 : index
    %69 = vector.load %arg14[%c0_87, %c0_88, %c0_89] : memref<2x1x128xf32, #tpu.memory_space<vmem>>, vector<1x1x128xf32>
    %70 = vector.shape_cast %69 : vector<1x1x128xf32> to vector<1x128xf32>
    %c0_90 = arith.constant 0 : index
    %c0_91 = arith.constant 0 : index
    %c0_92 = arith.constant 0 : index
    %71 = vector.load %arg15[%c0_90, %c0_91, %c0_92] : memref<2x1x128xf32, #tpu.memory_space<vmem>>, vector<1x1x128xf32>
    %72 = vector.shape_cast %71 : vector<1x1x128xf32> to vector<1x128xf32>
    %c0_93 = arith.constant 0 : index
    %c0_94 = arith.constant 0 : index
    %c0_95 = arith.constant 0 : index
    %73 = vector.load %arg16[%c0_93, %c0_94, %c0_95] : memref<2x1x128xf32, #tpu.memory_space<vmem>>, vector<1x1x128xf32>
    %74 = vector.shape_cast %73 : vector<1x1x128xf32> to vector<1x128xf32>
    %c0_i32_96 = arith.constant 0 : i32
    %c0_i32_97 = arith.constant 0 : i32
    %c0_i32_98 = arith.constant 0 : i32
    %c0_i32_99 = arith.constant 0 : i32
    %c0_i32_100 = arith.constant 0 : i32
    %c0_i32_101 = arith.constant 0 : i32
    %75 = tpu.memref_slice %arg5[%c0_i32_96, %c0_i32_100, %c0_i32_101] : memref<2x128x384xbf16, #tpu.memory_space<any>> -> memref<1x128x384xbf16, #tpu.memory_space<any>>
    %76 = tpu.memref_squeeze %75 : memref<1x128x384xbf16, #tpu.memory_space<any>> -> memref<128x384xbf16, #tpu.memory_space<any>>
    %c0_i32_102 = arith.constant 0 : i32
    %c0_i32_103 = arith.constant 0 : i32
    %77 = tpu.memref_slice %arg18[%c0_i32_97, %c0_i32_102, %c0_i32_103] : memref<2x128x384xbf16, #tpu.memory_space<vmem>> -> memref<1x128x384xbf16, #tpu.memory_space<vmem>>
    %78 = tpu.memref_squeeze %77 : memref<1x128x384xbf16, #tpu.memory_space<vmem>> -> memref<128x384xbf16, #tpu.memory_space<vmem>>
    %79 = tpu.memref_slice %arg22[%c0_i32_98, %c0_i32_99] : memref<2x4x!tpu.dma_semaphore, #tpu.memory_space<semaphore_mem>> -> memref<1x1x!tpu.dma_semaphore, #tpu.memory_space<semaphore_mem>>
    %80 = tpu.memref_squeeze %79 : memref<1x1x!tpu.dma_semaphore, #tpu.memory_space<semaphore_mem>> -> memref<!tpu.dma_semaphore, #tpu.memory_space<semaphore_mem>>
    tpu.wait_dma2 semaphore(%80 : memref<!tpu.dma_semaphore, #tpu.memory_space<semaphore_mem>>) src(%76 : memref<128x384xbf16, #tpu.memory_space<any>>) dst(%78 : memref<128x384xbf16, #tpu.memory_space<vmem>>)
    %81 = arith.truncf %57 : vector<16x128xf32> to vector<16x128xbf16>
    %c0_104 = arith.constant 0 : index
    %c0_105 = arith.constant 0 : index
    %c0_106 = arith.constant 0 : index
    %82 = vector.load %arg18[%c0_104, %c0_105, %c0_106] : memref<2x128x384xbf16, #tpu.memory_space<vmem>>, vector<1x128x384xbf16>
    %83 = vector.shape_cast %82 : vector<1x128x384xbf16> to vector<128x384xbf16>
    %cst = arith.constant dense<0.000000e+00> : vector<16x384xf32>
    %84 = tpu.matmul %81, %83, %cst {dimension_numbers = #tpu.dot_dimension_numbers<[1], [0], [0], [1], [0, 0, 1, 1], [], []>} : vector<16x128xbf16>, vector<128x384xbf16>, vector<16x384xf32> -> vector<16x384xf32>
    %85 = vector.broadcast %60 : vector<1x384xf32> to vector<16x384xf32>
    %86 = arith.addf %84, %85 : vector<16x384xf32>
    %87 = vector.extract_strided_slice %86 {offsets = [0, 0], sizes = [16, 128], strides = [1, 1]} : vector<16x384xf32> to vector<16x128xf32>
    %88 = vector.extract_strided_slice %86 {offsets = [0, 128], sizes = [16, 128], strides = [1, 1]} : vector<16x384xf32> to vector<16x128xf32>
    %89 = vector.extract_strided_slice %86 {offsets = [0, 256], sizes = [16, 128], strides = [1, 1]} : vector<16x384xf32> to vector<16x128xf32>
    %90 = vector.shape_cast %87 : vector<16x128xf32> to vector<2x1x8x128xf32>
    %91 = vector.shape_cast %88 : vector<16x128xf32> to vector<1x2x8x128xf32>
    %92 = vector.broadcast %90 : vector<2x1x8x128xf32> to vector<2x2x8x128xf32>
    %93 = vector.broadcast %91 : vector<1x2x8x128xf32> to vector<2x2x8x128xf32>
    %94 = arith.mulf %92, %93 : vector<2x2x8x128xf32>
    %95 = vector.shape_cast %94 : vector<2x2x8x128xf32> to vector<32x128xf32>
    %96 = arith.truncf %95 : vector<32x128xf32> to vector<32x128xbf16>
    %cst_107 = arith.constant dense<0.000000e+00> : vector<32x128xf32>
    %97 = tpu.matmul %96, %58, %cst_107 {dimension_numbers = #tpu.dot_dimension_numbers<[1], [0], [0], [1], [0, 0, 1, 1], [], []>} : vector<32x128xbf16>, vector<128x128xbf16>, vector<32x128xf32> -> vector<32x128xf32>
    %98 = vector.shape_cast %97 : vector<32x128xf32> to vector<2x2x8x128xf32>
    %cst_108 = arith.constant dense<0xFF800000> : vector<2x8x128xf32>
    %99 = vector.multi_reduction <maximumf>, %98, %cst_108 [1] : vector<2x2x8x128xf32> to vector<2x8x128xf32>
    %100 = vector.shape_cast %99 : vector<2x8x128xf32> to vector<2x1x8x128xf32>
    %101 = vector.broadcast %100 : vector<2x1x8x128xf32> to vector<2x2x8x128xf32>
    %102 = arith.subf %98, %101 : vector<2x2x8x128xf32>
    %103 = math.exp %102 : vector<2x2x8x128xf32>
    %cst_109 = arith.constant dense<0.000000e+00> : vector<2x8x128xf32>
    %104 = vector.multi_reduction <add>, %103, %cst_109 [1] : vector<2x2x8x128xf32> to vector<2x8x128xf32>
    %105 = vector.shape_cast %104 : vector<2x8x128xf32> to vector<2x1x8x128xf32>
    %106 = tpu.reciprocal %105 {approx = true} : vector<2x1x8x128xf32> -> vector<2x1x8x128xf32>
    %107 = vector.broadcast %106 : vector<2x1x8x128xf32> to vector<2x2x8x128xf32>
    %108 = arith.mulf %103, %107 : vector<2x2x8x128xf32>
    %109 = vector.shape_cast %89 : vector<16x128xf32> to vector<1x2x8x128xf32>
    %110 = vector.broadcast %109 : vector<1x2x8x128xf32> to vector<2x2x8x128xf32>
    %111 = arith.mulf %108, %110 : vector<2x2x8x128xf32>
    %cst_110 = arith.constant dense<0.000000e+00> : vector<2x8x128xf32>
    %112 = vector.multi_reduction <add>, %111, %cst_110 [1] : vector<2x2x8x128xf32> to vector<2x8x128xf32>
    %113 = vector.shape_cast %112 : vector<2x8x128xf32> to vector<16x128xf32>
    %c0_i32_111 = arith.constant 0 : i32
    %c0_i32_112 = arith.constant 0 : i32
    %c0_i32_113 = arith.constant 0 : i32
    %c1_i32_114 = arith.constant 1 : i32
    %c0_i32_115 = arith.constant 0 : i32
    %c0_i32_116 = arith.constant 0 : i32
    %114 = tpu.memref_slice %arg6[%c0_i32_111, %c0_i32_115, %c0_i32_116] : memref<2x128x128xbf16, #tpu.memory_space<any>> -> memref<1x128x128xbf16, #tpu.memory_space<any>>
    %115 = tpu.memref_squeeze %114 : memref<1x128x128xbf16, #tpu.memory_space<any>> -> memref<128x128xbf16, #tpu.memory_space<any>>
    %c0_i32_117 = arith.constant 0 : i32
    %c0_i32_118 = arith.constant 0 : i32
    %116 = tpu.memref_slice %arg19[%c0_i32_112, %c0_i32_117, %c0_i32_118] : memref<2x128x128xbf16, #tpu.memory_space<vmem>> -> memref<1x128x128xbf16, #tpu.memory_space<vmem>>
    %117 = tpu.memref_squeeze %116 : memref<1x128x128xbf16, #tpu.memory_space<vmem>> -> memref<128x128xbf16, #tpu.memory_space<vmem>>
    %118 = tpu.memref_slice %arg22[%c0_i32_113, %c1_i32_114] : memref<2x4x!tpu.dma_semaphore, #tpu.memory_space<semaphore_mem>> -> memref<1x1x!tpu.dma_semaphore, #tpu.memory_space<semaphore_mem>>
    %119 = tpu.memref_squeeze %118 : memref<1x1x!tpu.dma_semaphore, #tpu.memory_space<semaphore_mem>> -> memref<!tpu.dma_semaphore, #tpu.memory_space<semaphore_mem>>
    tpu.wait_dma2 semaphore(%119 : memref<!tpu.dma_semaphore, #tpu.memory_space<semaphore_mem>>) src(%115 : memref<128x128xbf16, #tpu.memory_space<any>>) dst(%117 : memref<128x128xbf16, #tpu.memory_space<vmem>>)
    %120 = arith.truncf %113 : vector<16x128xf32> to vector<16x128xbf16>
    %c0_119 = arith.constant 0 : index
    %c0_120 = arith.constant 0 : index
    %c0_121 = arith.constant 0 : index
    %121 = vector.load %arg19[%c0_119, %c0_120, %c0_121] : memref<2x128x128xbf16, #tpu.memory_space<vmem>>, vector<1x128x128xbf16>
    %122 = vector.shape_cast %121 : vector<1x128x128xbf16> to vector<128x128xbf16>
    %cst_122 = arith.constant dense<0.000000e+00> : vector<16x128xf32>
    %123 = tpu.matmul %120, %122, %cst_122 {dimension_numbers = #tpu.dot_dimension_numbers<[1], [0], [0], [1], [0, 0, 1, 1], [], []>} : vector<16x128xbf16>, vector<128x128xbf16>, vector<16x128xf32> -> vector<16x128xf32>
    %124 = vector.broadcast %62 : vector<1x128xf32> to vector<16x128xf32>
    %125 = arith.addf %123, %124 : vector<16x128xf32>
    %126 = arith.addf %57, %125 : vector<16x128xf32>
    %cst_123 = arith.constant dense<0.000000e+00> : vector<16xf32>
    %127 = vector.multi_reduction <add>, %126, %cst_123 [1] : vector<16x128xf32> to vector<16xf32>
    %128 = vector.shape_cast %127 : vector<16xf32> to vector<16x1xf32>
    %cst_124 = arith.constant 1.280000e+02 : f32
    %129 = vector.broadcast %cst_124 : f32 to vector<16x1xf32>
    %130 = arith.divf %128, %129 : vector<16x1xf32>
    %131 = vector.broadcast %130 : vector<16x1xf32> to vector<16x128xf32>
    %132 = arith.subf %126, %131 : vector<16x128xf32>
    %133 = arith.mulf %132, %132 : vector<16x128xf32>
    %cst_125 = arith.constant dense<0.000000e+00> : vector<16xf32>
    %134 = vector.multi_reduction <add>, %133, %cst_125 [1] : vector<16x128xf32> to vector<16xf32>
    %135 = vector.shape_cast %134 : vector<16xf32> to vector<16x1xf32>
    %cst_126 = arith.constant 1.280000e+02 : f32
    %136 = vector.broadcast %cst_126 : f32 to vector<16x1xf32>
    %137 = arith.divf %135, %136 : vector<16x1xf32>
    %cst_127 = arith.constant 9.99999974E-6 : f32
    %138 = vector.broadcast %cst_127 : f32 to vector<16x1xf32>
    %139 = arith.addf %137, %138 : vector<16x1xf32>
    %140 = math.rsqrt %139 : vector<16x1xf32>
    %141 = vector.broadcast %140 : vector<16x1xf32> to vector<16x128xf32>
    %142 = arith.mulf %132, %141 : vector<16x128xf32>
    %143 = vector.broadcast %64 : vector<1x128xf32> to vector<16x128xf32>
    %144 = arith.mulf %142, %143 : vector<16x128xf32>
    %145 = vector.broadcast %66 : vector<1x128xf32> to vector<16x128xf32>
    %146 = arith.addf %144, %145 : vector<16x128xf32>
    %c0_i32_128 = arith.constant 0 : i32
    %c0_i32_129 = arith.constant 0 : i32
    %c0_i32_130 = arith.constant 0 : i32
    %c2_i32_131 = arith.constant 2 : i32
    %c0_i32_132 = arith.constant 0 : i32
    %c0_i32_133 = arith.constant 0 : i32
    %147 = tpu.memref_slice %arg7[%c0_i32_128, %c0_i32_132, %c0_i32_133] : memref<2x128x512xbf16, #tpu.memory_space<any>> -> memref<1x128x512xbf16, #tpu.memory_space<any>>
    %148 = tpu.memref_squeeze %147 : memref<1x128x512xbf16, #tpu.memory_space<any>> -> memref<128x512xbf16, #tpu.memory_space<any>>
    %c0_i32_134 = arith.constant 0 : i32
    %c0_i32_135 = arith.constant 0 : i32
    %149 = tpu.memref_slice %arg20[%c0_i32_129, %c0_i32_134, %c0_i32_135] : memref<2x128x512xbf16, #tpu.memory_space<vmem>> -> memref<1x128x512xbf16, #tpu.memory_space<vmem>>
    %150 = tpu.memref_squeeze %149 : memref<1x128x512xbf16, #tpu.memory_space<vmem>> -> memref<128x512xbf16, #tpu.memory_space<vmem>>
    %151 = tpu.memref_slice %arg22[%c0_i32_130, %c2_i32_131] : memref<2x4x!tpu.dma_semaphore, #tpu.memory_space<semaphore_mem>> -> memref<1x1x!tpu.dma_semaphore, #tpu.memory_space<semaphore_mem>>
    %152 = tpu.memref_squeeze %151 : memref<1x1x!tpu.dma_semaphore, #tpu.memory_space<semaphore_mem>> -> memref<!tpu.dma_semaphore, #tpu.memory_space<semaphore_mem>>
    tpu.wait_dma2 semaphore(%152 : memref<!tpu.dma_semaphore, #tpu.memory_space<semaphore_mem>>) src(%148 : memref<128x512xbf16, #tpu.memory_space<any>>) dst(%150 : memref<128x512xbf16, #tpu.memory_space<vmem>>)
    %153 = arith.truncf %146 : vector<16x128xf32> to vector<16x128xbf16>
    %c0_136 = arith.constant 0 : index
    %c0_137 = arith.constant 0 : index
    %c0_138 = arith.constant 0 : index
    %154 = vector.load %arg20[%c0_136, %c0_137, %c0_138] : memref<2x128x512xbf16, #tpu.memory_space<vmem>>, vector<1x128x512xbf16>
    %155 = vector.shape_cast %154 : vector<1x128x512xbf16> to vector<128x512xbf16>
    %cst_139 = arith.constant dense<0.000000e+00> : vector<16x512xf32>
    %156 = tpu.matmul %153, %155, %cst_139 {dimension_numbers = #tpu.dot_dimension_numbers<[1], [0], [0], [1], [0, 0, 1, 1], [], []>} : vector<16x128xbf16>, vector<128x512xbf16>, vector<16x512xf32> -> vector<16x512xf32>
    %157 = vector.broadcast %68 : vector<1x512xf32> to vector<16x512xf32>
    %158 = arith.addf %156, %157 : vector<16x512xf32>
    %cst_140 = arith.constant 0.000000e+00 : f32
    %159 = vector.broadcast %cst_140 : f32 to vector<16x512xf32>
    %160 = arith.maximumf %158, %159 : vector<16x512xf32>
    %c0_i32_141 = arith.constant 0 : i32
    %c0_i32_142 = arith.constant 0 : i32
    %c0_i32_143 = arith.constant 0 : i32
    %c3_i32_144 = arith.constant 3 : i32
    %c0_i32_145 = arith.constant 0 : i32
    %c0_i32_146 = arith.constant 0 : i32
    %161 = tpu.memref_slice %arg8[%c0_i32_141, %c0_i32_145, %c0_i32_146] : memref<2x512x128xbf16, #tpu.memory_space<any>> -> memref<1x512x128xbf16, #tpu.memory_space<any>>
    %162 = tpu.memref_squeeze %161 : memref<1x512x128xbf16, #tpu.memory_space<any>> -> memref<512x128xbf16, #tpu.memory_space<any>>
    %c0_i32_147 = arith.constant 0 : i32
    %c0_i32_148 = arith.constant 0 : i32
    %163 = tpu.memref_slice %arg21[%c0_i32_142, %c0_i32_147, %c0_i32_148] : memref<2x512x128xbf16, #tpu.memory_space<vmem>> -> memref<1x512x128xbf16, #tpu.memory_space<vmem>>
    %164 = tpu.memref_squeeze %163 : memref<1x512x128xbf16, #tpu.memory_space<vmem>> -> memref<512x128xbf16, #tpu.memory_space<vmem>>
    %165 = tpu.memref_slice %arg22[%c0_i32_143, %c3_i32_144] : memref<2x4x!tpu.dma_semaphore, #tpu.memory_space<semaphore_mem>> -> memref<1x1x!tpu.dma_semaphore, #tpu.memory_space<semaphore_mem>>
    %166 = tpu.memref_squeeze %165 : memref<1x1x!tpu.dma_semaphore, #tpu.memory_space<semaphore_mem>> -> memref<!tpu.dma_semaphore, #tpu.memory_space<semaphore_mem>>
    tpu.wait_dma2 semaphore(%166 : memref<!tpu.dma_semaphore, #tpu.memory_space<semaphore_mem>>) src(%162 : memref<512x128xbf16, #tpu.memory_space<any>>) dst(%164 : memref<512x128xbf16, #tpu.memory_space<vmem>>)
    %167 = arith.truncf %160 : vector<16x512xf32> to vector<16x512xbf16>
    %c0_149 = arith.constant 0 : index
    %c0_150 = arith.constant 0 : index
    %c0_151 = arith.constant 0 : index
    %168 = vector.load %arg21[%c0_149, %c0_150, %c0_151] : memref<2x512x128xbf16, #tpu.memory_space<vmem>>, vector<1x512x128xbf16>
    %169 = vector.shape_cast %168 : vector<1x512x128xbf16> to vector<512x128xbf16>
    %cst_152 = arith.constant dense<0.000000e+00> : vector<16x128xf32>
    %170 = tpu.matmul %167, %169, %cst_152 {dimension_numbers = #tpu.dot_dimension_numbers<[1], [0], [0], [1], [0, 0, 1, 1], [], []>} : vector<16x512xbf16>, vector<512x128xbf16>, vector<16x128xf32> -> vector<16x128xf32>
    %171 = vector.broadcast %70 : vector<1x128xf32> to vector<16x128xf32>
    %172 = arith.addf %170, %171 : vector<16x128xf32>
    %173 = arith.addf %146, %172 : vector<16x128xf32>
    %cst_153 = arith.constant dense<0.000000e+00> : vector<16xf32>
    %174 = vector.multi_reduction <add>, %173, %cst_153 [1] : vector<16x128xf32> to vector<16xf32>
    %175 = vector.shape_cast %174 : vector<16xf32> to vector<16x1xf32>
    %cst_154 = arith.constant 1.280000e+02 : f32
    %176 = vector.broadcast %cst_154 : f32 to vector<16x1xf32>
    %177 = arith.divf %175, %176 : vector<16x1xf32>
    %178 = vector.broadcast %177 : vector<16x1xf32> to vector<16x128xf32>
    %179 = arith.subf %173, %178 : vector<16x128xf32>
    %180 = arith.mulf %179, %179 : vector<16x128xf32>
    %cst_155 = arith.constant dense<0.000000e+00> : vector<16xf32>
    %181 = vector.multi_reduction <add>, %180, %cst_155 [1] : vector<16x128xf32> to vector<16xf32>
    %182 = vector.shape_cast %181 : vector<16xf32> to vector<16x1xf32>
    %cst_156 = arith.constant 1.280000e+02 : f32
    %183 = vector.broadcast %cst_156 : f32 to vector<16x1xf32>
    %184 = arith.divf %182, %183 : vector<16x1xf32>
    %cst_157 = arith.constant 9.99999974E-6 : f32
    %185 = vector.broadcast %cst_157 : f32 to vector<16x1xf32>
    %186 = arith.addf %184, %185 : vector<16x1xf32>
    %187 = math.rsqrt %186 : vector<16x1xf32>
    %188 = vector.broadcast %187 : vector<16x1xf32> to vector<16x128xf32>
    %189 = arith.mulf %179, %188 : vector<16x128xf32>
    %190 = vector.broadcast %72 : vector<1x128xf32> to vector<16x128xf32>
    %191 = arith.mulf %189, %190 : vector<16x128xf32>
    %192 = vector.broadcast %74 : vector<1x128xf32> to vector<16x128xf32>
    %193 = arith.addf %191, %192 : vector<16x128xf32>
    %c1 = arith.constant 1 : index
    %c0_158 = arith.constant 0 : index
    %c0_159 = arith.constant 0 : index
    %194 = vector.load %arg9[%c1, %c0_158, %c0_159] : memref<2x1x384xf32, #tpu.memory_space<vmem>>, vector<1x1x384xf32>
    %195 = vector.shape_cast %194 : vector<1x1x384xf32> to vector<1x384xf32>
    %c1_160 = arith.constant 1 : index
    %c0_161 = arith.constant 0 : index
    %c0_162 = arith.constant 0 : index
    %196 = vector.load %arg10[%c1_160, %c0_161, %c0_162] : memref<2x1x128xf32, #tpu.memory_space<vmem>>, vector<1x1x128xf32>
    %197 = vector.shape_cast %196 : vector<1x1x128xf32> to vector<1x128xf32>
    %c1_163 = arith.constant 1 : index
    %c0_164 = arith.constant 0 : index
    %c0_165 = arith.constant 0 : index
    %198 = vector.load %arg11[%c1_163, %c0_164, %c0_165] : memref<2x1x128xf32, #tpu.memory_space<vmem>>, vector<1x1x128xf32>
    %199 = vector.shape_cast %198 : vector<1x1x128xf32> to vector<1x128xf32>
    %c1_166 = arith.constant 1 : index
    %c0_167 = arith.constant 0 : index
    %c0_168 = arith.constant 0 : index
    %200 = vector.load %arg12[%c1_166, %c0_167, %c0_168] : memref<2x1x128xf32, #tpu.memory_space<vmem>>, vector<1x1x128xf32>
    %201 = vector.shape_cast %200 : vector<1x1x128xf32> to vector<1x128xf32>
    %c1_169 = arith.constant 1 : index
    %c0_170 = arith.constant 0 : index
    %c0_171 = arith.constant 0 : index
    %202 = vector.load %arg13[%c1_169, %c0_170, %c0_171] : memref<2x1x512xf32, #tpu.memory_space<vmem>>, vector<1x1x512xf32>
    %203 = vector.shape_cast %202 : vector<1x1x512xf32> to vector<1x512xf32>
    %c1_172 = arith.constant 1 : index
    %c0_173 = arith.constant 0 : index
    %c0_174 = arith.constant 0 : index
    %204 = vector.load %arg14[%c1_172, %c0_173, %c0_174] : memref<2x1x128xf32, #tpu.memory_space<vmem>>, vector<1x1x128xf32>
    %205 = vector.shape_cast %204 : vector<1x1x128xf32> to vector<1x128xf32>
    %c1_175 = arith.constant 1 : index
    %c0_176 = arith.constant 0 : index
    %c0_177 = arith.constant 0 : index
    %206 = vector.load %arg15[%c1_175, %c0_176, %c0_177] : memref<2x1x128xf32, #tpu.memory_space<vmem>>, vector<1x1x128xf32>
    %207 = vector.shape_cast %206 : vector<1x1x128xf32> to vector<1x128xf32>
    %c1_178 = arith.constant 1 : index
    %c0_179 = arith.constant 0 : index
    %c0_180 = arith.constant 0 : index
    %208 = vector.load %arg16[%c1_178, %c0_179, %c0_180] : memref<2x1x128xf32, #tpu.memory_space<vmem>>, vector<1x1x128xf32>
    %209 = vector.shape_cast %208 : vector<1x1x128xf32> to vector<1x128xf32>
    %c1_i32_181 = arith.constant 1 : i32
    %c1_i32_182 = arith.constant 1 : i32
    %c1_i32_183 = arith.constant 1 : i32
    %c0_i32_184 = arith.constant 0 : i32
    %c0_i32_185 = arith.constant 0 : i32
    %c0_i32_186 = arith.constant 0 : i32
    %210 = tpu.memref_slice %arg5[%c1_i32_181, %c0_i32_185, %c0_i32_186] : memref<2x128x384xbf16, #tpu.memory_space<any>> -> memref<1x128x384xbf16, #tpu.memory_space<any>>
    %211 = tpu.memref_squeeze %210 : memref<1x128x384xbf16, #tpu.memory_space<any>> -> memref<128x384xbf16, #tpu.memory_space<any>>
    %c0_i32_187 = arith.constant 0 : i32
    %c0_i32_188 = arith.constant 0 : i32
    %212 = tpu.memref_slice %arg18[%c1_i32_182, %c0_i32_187, %c0_i32_188] : memref<2x128x384xbf16, #tpu.memory_space<vmem>> -> memref<1x128x384xbf16, #tpu.memory_space<vmem>>
    %213 = tpu.memref_squeeze %212 : memref<1x128x384xbf16, #tpu.memory_space<vmem>> -> memref<128x384xbf16, #tpu.memory_space<vmem>>
    %214 = tpu.memref_slice %arg22[%c1_i32_183, %c0_i32_184] : memref<2x4x!tpu.dma_semaphore, #tpu.memory_space<semaphore_mem>> -> memref<1x1x!tpu.dma_semaphore, #tpu.memory_space<semaphore_mem>>
    %215 = tpu.memref_squeeze %214 : memref<1x1x!tpu.dma_semaphore, #tpu.memory_space<semaphore_mem>> -> memref<!tpu.dma_semaphore, #tpu.memory_space<semaphore_mem>>
    tpu.wait_dma2 semaphore(%215 : memref<!tpu.dma_semaphore, #tpu.memory_space<semaphore_mem>>) src(%211 : memref<128x384xbf16, #tpu.memory_space<any>>) dst(%213 : memref<128x384xbf16, #tpu.memory_space<vmem>>)
    %216 = arith.truncf %193 : vector<16x128xf32> to vector<16x128xbf16>
    %c1_189 = arith.constant 1 : index
    %c0_190 = arith.constant 0 : index
    %c0_191 = arith.constant 0 : index
    %217 = vector.load %arg18[%c1_189, %c0_190, %c0_191] : memref<2x128x384xbf16, #tpu.memory_space<vmem>>, vector<1x128x384xbf16>
    %218 = vector.shape_cast %217 : vector<1x128x384xbf16> to vector<128x384xbf16>
    %cst_192 = arith.constant dense<0.000000e+00> : vector<16x384xf32>
    %219 = tpu.matmul %216, %218, %cst_192 {dimension_numbers = #tpu.dot_dimension_numbers<[1], [0], [0], [1], [0, 0, 1, 1], [], []>} : vector<16x128xbf16>, vector<128x384xbf16>, vector<16x384xf32> -> vector<16x384xf32>
    %220 = vector.broadcast %195 : vector<1x384xf32> to vector<16x384xf32>
    %221 = arith.addf %219, %220 : vector<16x384xf32>
    %222 = vector.extract_strided_slice %221 {offsets = [0, 0], sizes = [16, 128], strides = [1, 1]} : vector<16x384xf32> to vector<16x128xf32>
    %223 = vector.extract_strided_slice %221 {offsets = [0, 128], sizes = [16, 128], strides = [1, 1]} : vector<16x384xf32> to vector<16x128xf32>
    %224 = vector.extract_strided_slice %221 {offsets = [0, 256], sizes = [16, 128], strides = [1, 1]} : vector<16x384xf32> to vector<16x128xf32>
    %225 = vector.shape_cast %222 : vector<16x128xf32> to vector<2x1x8x128xf32>
    %226 = vector.shape_cast %223 : vector<16x128xf32> to vector<1x2x8x128xf32>
    %227 = vector.broadcast %225 : vector<2x1x8x128xf32> to vector<2x2x8x128xf32>
    %228 = vector.broadcast %226 : vector<1x2x8x128xf32> to vector<2x2x8x128xf32>
    %229 = arith.mulf %227, %228 : vector<2x2x8x128xf32>
    %230 = vector.shape_cast %229 : vector<2x2x8x128xf32> to vector<32x128xf32>
    %231 = arith.truncf %230 : vector<32x128xf32> to vector<32x128xbf16>
    %cst_193 = arith.constant dense<0.000000e+00> : vector<32x128xf32>
    %232 = tpu.matmul %231, %58, %cst_193 {dimension_numbers = #tpu.dot_dimension_numbers<[1], [0], [0], [1], [0, 0, 1, 1], [], []>} : vector<32x128xbf16>, vector<128x128xbf16>, vector<32x128xf32> -> vector<32x128xf32>
    %233 = vector.shape_cast %232 : vector<32x128xf32> to vector<2x2x8x128xf32>
    %cst_194 = arith.constant dense<0xFF800000> : vector<2x8x128xf32>
    %234 = vector.multi_reduction <maximumf>, %233, %cst_194 [1] : vector<2x2x8x128xf32> to vector<2x8x128xf32>
    %235 = vector.shape_cast %234 : vector<2x8x128xf32> to vector<2x1x8x128xf32>
    %236 = vector.broadcast %235 : vector<2x1x8x128xf32> to vector<2x2x8x128xf32>
    %237 = arith.subf %233, %236 : vector<2x2x8x128xf32>
    %238 = math.exp %237 : vector<2x2x8x128xf32>
    %cst_195 = arith.constant dense<0.000000e+00> : vector<2x8x128xf32>
    %239 = vector.multi_reduction <add>, %238, %cst_195 [1] : vector<2x2x8x128xf32> to vector<2x8x128xf32>
    %240 = vector.shape_cast %239 : vector<2x8x128xf32> to vector<2x1x8x128xf32>
    %241 = tpu.reciprocal %240 {approx = true} : vector<2x1x8x128xf32> -> vector<2x1x8x128xf32>
    %242 = vector.broadcast %241 : vector<2x1x8x128xf32> to vector<2x2x8x128xf32>
    %243 = arith.mulf %238, %242 : vector<2x2x8x128xf32>
    %244 = vector.shape_cast %224 : vector<16x128xf32> to vector<1x2x8x128xf32>
    %245 = vector.broadcast %244 : vector<1x2x8x128xf32> to vector<2x2x8x128xf32>
    %246 = arith.mulf %243, %245 : vector<2x2x8x128xf32>
    %cst_196 = arith.constant dense<0.000000e+00> : vector<2x8x128xf32>
    %247 = vector.multi_reduction <add>, %246, %cst_196 [1] : vector<2x2x8x128xf32> to vector<2x8x128xf32>
    %248 = vector.shape_cast %247 : vector<2x8x128xf32> to vector<16x128xf32>
    %c1_i32_197 = arith.constant 1 : i32
    %c1_i32_198 = arith.constant 1 : i32
    %c1_i32_199 = arith.constant 1 : i32
    %c1_i32_200 = arith.constant 1 : i32
    %c0_i32_201 = arith.constant 0 : i32
    %c0_i32_202 = arith.constant 0 : i32
    %249 = tpu.memref_slice %arg6[%c1_i32_197, %c0_i32_201, %c0_i32_202] : memref<2x128x128xbf16, #tpu.memory_space<any>> -> memref<1x128x128xbf16, #tpu.memory_space<any>>
    %250 = tpu.memref_squeeze %249 : memref<1x128x128xbf16, #tpu.memory_space<any>> -> memref<128x128xbf16, #tpu.memory_space<any>>
    %c0_i32_203 = arith.constant 0 : i32
    %c0_i32_204 = arith.constant 0 : i32
    %251 = tpu.memref_slice %arg19[%c1_i32_198, %c0_i32_203, %c0_i32_204] : memref<2x128x128xbf16, #tpu.memory_space<vmem>> -> memref<1x128x128xbf16, #tpu.memory_space<vmem>>
    %252 = tpu.memref_squeeze %251 : memref<1x128x128xbf16, #tpu.memory_space<vmem>> -> memref<128x128xbf16, #tpu.memory_space<vmem>>
    %253 = tpu.memref_slice %arg22[%c1_i32_199, %c1_i32_200] : memref<2x4x!tpu.dma_semaphore, #tpu.memory_space<semaphore_mem>> -> memref<1x1x!tpu.dma_semaphore, #tpu.memory_space<semaphore_mem>>
    %254 = tpu.memref_squeeze %253 : memref<1x1x!tpu.dma_semaphore, #tpu.memory_space<semaphore_mem>> -> memref<!tpu.dma_semaphore, #tpu.memory_space<semaphore_mem>>
    tpu.wait_dma2 semaphore(%254 : memref<!tpu.dma_semaphore, #tpu.memory_space<semaphore_mem>>) src(%250 : memref<128x128xbf16, #tpu.memory_space<any>>) dst(%252 : memref<128x128xbf16, #tpu.memory_space<vmem>>)
    %255 = arith.truncf %248 : vector<16x128xf32> to vector<16x128xbf16>
    %c1_205 = arith.constant 1 : index
    %c0_206 = arith.constant 0 : index
    %c0_207 = arith.constant 0 : index
    %256 = vector.load %arg19[%c1_205, %c0_206, %c0_207] : memref<2x128x128xbf16, #tpu.memory_space<vmem>>, vector<1x128x128xbf16>
    %257 = vector.shape_cast %256 : vector<1x128x128xbf16> to vector<128x128xbf16>
    %cst_208 = arith.constant dense<0.000000e+00> : vector<16x128xf32>
    %258 = tpu.matmul %255, %257, %cst_208 {dimension_numbers = #tpu.dot_dimension_numbers<[1], [0], [0], [1], [0, 0, 1, 1], [], []>} : vector<16x128xbf16>, vector<128x128xbf16>, vector<16x128xf32> -> vector<16x128xf32>
    %259 = vector.broadcast %197 : vector<1x128xf32> to vector<16x128xf32>
    %260 = arith.addf %258, %259 : vector<16x128xf32>
    %261 = arith.addf %193, %260 : vector<16x128xf32>
    %cst_209 = arith.constant dense<0.000000e+00> : vector<16xf32>
    %262 = vector.multi_reduction <add>, %261, %cst_209 [1] : vector<16x128xf32> to vector<16xf32>
    %263 = vector.shape_cast %262 : vector<16xf32> to vector<16x1xf32>
    %cst_210 = arith.constant 1.280000e+02 : f32
    %264 = vector.broadcast %cst_210 : f32 to vector<16x1xf32>
    %265 = arith.divf %263, %264 : vector<16x1xf32>
    %266 = vector.broadcast %265 : vector<16x1xf32> to vector<16x128xf32>
    %267 = arith.subf %261, %266 : vector<16x128xf32>
    %268 = arith.mulf %267, %267 : vector<16x128xf32>
    %cst_211 = arith.constant dense<0.000000e+00> : vector<16xf32>
    %269 = vector.multi_reduction <add>, %268, %cst_211 [1] : vector<16x128xf32> to vector<16xf32>
    %270 = vector.shape_cast %269 : vector<16xf32> to vector<16x1xf32>
    %cst_212 = arith.constant 1.280000e+02 : f32
    %271 = vector.broadcast %cst_212 : f32 to vector<16x1xf32>
    %272 = arith.divf %270, %271 : vector<16x1xf32>
    %cst_213 = arith.constant 9.99999974E-6 : f32
    %273 = vector.broadcast %cst_213 : f32 to vector<16x1xf32>
    %274 = arith.addf %272, %273 : vector<16x1xf32>
    %275 = math.rsqrt %274 : vector<16x1xf32>
    %276 = vector.broadcast %275 : vector<16x1xf32> to vector<16x128xf32>
    %277 = arith.mulf %267, %276 : vector<16x128xf32>
    %278 = vector.broadcast %199 : vector<1x128xf32> to vector<16x128xf32>
    %279 = arith.mulf %277, %278 : vector<16x128xf32>
    %280 = vector.broadcast %201 : vector<1x128xf32> to vector<16x128xf32>
    %281 = arith.addf %279, %280 : vector<16x128xf32>
    %c1_i32_214 = arith.constant 1 : i32
    %c1_i32_215 = arith.constant 1 : i32
    %c1_i32_216 = arith.constant 1 : i32
    %c2_i32_217 = arith.constant 2 : i32
    %c0_i32_218 = arith.constant 0 : i32
    %c0_i32_219 = arith.constant 0 : i32
    %282 = tpu.memref_slice %arg7[%c1_i32_214, %c0_i32_218, %c0_i32_219] : memref<2x128x512xbf16, #tpu.memory_space<any>> -> memref<1x128x512xbf16, #tpu.memory_space<any>>
    %283 = tpu.memref_squeeze %282 : memref<1x128x512xbf16, #tpu.memory_space<any>> -> memref<128x512xbf16, #tpu.memory_space<any>>
    %c0_i32_220 = arith.constant 0 : i32
    %c0_i32_221 = arith.constant 0 : i32
    %284 = tpu.memref_slice %arg20[%c1_i32_215, %c0_i32_220, %c0_i32_221] : memref<2x128x512xbf16, #tpu.memory_space<vmem>> -> memref<1x128x512xbf16, #tpu.memory_space<vmem>>
    %285 = tpu.memref_squeeze %284 : memref<1x128x512xbf16, #tpu.memory_space<vmem>> -> memref<128x512xbf16, #tpu.memory_space<vmem>>
    %286 = tpu.memref_slice %arg22[%c1_i32_216, %c2_i32_217] : memref<2x4x!tpu.dma_semaphore, #tpu.memory_space<semaphore_mem>> -> memref<1x1x!tpu.dma_semaphore, #tpu.memory_space<semaphore_mem>>
    %287 = tpu.memref_squeeze %286 : memref<1x1x!tpu.dma_semaphore, #tpu.memory_space<semaphore_mem>> -> memref<!tpu.dma_semaphore, #tpu.memory_space<semaphore_mem>>
    tpu.wait_dma2 semaphore(%287 : memref<!tpu.dma_semaphore, #tpu.memory_space<semaphore_mem>>) src(%283 : memref<128x512xbf16, #tpu.memory_space<any>>) dst(%285 : memref<128x512xbf16, #tpu.memory_space<vmem>>)
    %288 = arith.truncf %281 : vector<16x128xf32> to vector<16x128xbf16>
    %c1_222 = arith.constant 1 : index
    %c0_223 = arith.constant 0 : index
    %c0_224 = arith.constant 0 : index
    %289 = vector.load %arg20[%c1_222, %c0_223, %c0_224] : memref<2x128x512xbf16, #tpu.memory_space<vmem>>, vector<1x128x512xbf16>
    %290 = vector.shape_cast %289 : vector<1x128x512xbf16> to vector<128x512xbf16>
    %cst_225 = arith.constant dense<0.000000e+00> : vector<16x512xf32>
    %291 = tpu.matmul %288, %290, %cst_225 {dimension_numbers = #tpu.dot_dimension_numbers<[1], [0], [0], [1], [0, 0, 1, 1], [], []>} : vector<16x128xbf16>, vector<128x512xbf16>, vector<16x512xf32> -> vector<16x512xf32>
    %292 = vector.broadcast %203 : vector<1x512xf32> to vector<16x512xf32>
    %293 = arith.addf %291, %292 : vector<16x512xf32>
    %cst_226 = arith.constant 0.000000e+00 : f32
    %294 = vector.broadcast %cst_226 : f32 to vector<16x512xf32>
    %295 = arith.maximumf %293, %294 : vector<16x512xf32>
    %c1_i32_227 = arith.constant 1 : i32
    %c1_i32_228 = arith.constant 1 : i32
    %c1_i32_229 = arith.constant 1 : i32
    %c3_i32_230 = arith.constant 3 : i32
    %c0_i32_231 = arith.constant 0 : i32
    %c0_i32_232 = arith.constant 0 : i32
    %296 = tpu.memref_slice %arg8[%c1_i32_227, %c0_i32_231, %c0_i32_232] : memref<2x512x128xbf16, #tpu.memory_space<any>> -> memref<1x512x128xbf16, #tpu.memory_space<any>>
    %297 = tpu.memref_squeeze %296 : memref<1x512x128xbf16, #tpu.memory_space<any>> -> memref<512x128xbf16, #tpu.memory_space<any>>
    %c0_i32_233 = arith.constant 0 : i32
    %c0_i32_234 = arith.constant 0 : i32
    %298 = tpu.memref_slice %arg21[%c1_i32_228, %c0_i32_233, %c0_i32_234] : memref<2x512x128xbf16, #tpu.memory_space<vmem>> -> memref<1x512x128xbf16, #tpu.memory_space<vmem>>
    %299 = tpu.memref_squeeze %298 : memref<1x512x128xbf16, #tpu.memory_space<vmem>> -> memref<512x128xbf16, #tpu.memory_space<vmem>>
    %300 = tpu.memref_slice %arg22[%c1_i32_229, %c3_i32_230] : memref<2x4x!tpu.dma_semaphore, #tpu.memory_space<semaphore_mem>> -> memref<1x1x!tpu.dma_semaphore, #tpu.memory_space<semaphore_mem>>
    %301 = tpu.memref_squeeze %300 : memref<1x1x!tpu.dma_semaphore, #tpu.memory_space<semaphore_mem>> -> memref<!tpu.dma_semaphore, #tpu.memory_space<semaphore_mem>>
    tpu.wait_dma2 semaphore(%301 : memref<!tpu.dma_semaphore, #tpu.memory_space<semaphore_mem>>) src(%297 : memref<512x128xbf16, #tpu.memory_space<any>>) dst(%299 : memref<512x128xbf16, #tpu.memory_space<vmem>>)
    %302 = arith.truncf %295 : vector<16x512xf32> to vector<16x512xbf16>
    %c1_235 = arith.constant 1 : index
    %c0_236 = arith.constant 0 : index
    %c0_237 = arith.constant 0 : index
    %303 = vector.load %arg21[%c1_235, %c0_236, %c0_237] : memref<2x512x128xbf16, #tpu.memory_space<vmem>>, vector<1x512x128xbf16>
    %304 = vector.shape_cast %303 : vector<1x512x128xbf16> to vector<512x128xbf16>
    %cst_238 = arith.constant dense<0.000000e+00> : vector<16x128xf32>
    %305 = tpu.matmul %302, %304, %cst_238 {dimension_numbers = #tpu.dot_dimension_numbers<[1], [0], [0], [1], [0, 0, 1, 1], [], []>} : vector<16x512xbf16>, vector<512x128xbf16>, vector<16x128xf32> -> vector<16x128xf32>
    %306 = vector.broadcast %205 : vector<1x128xf32> to vector<16x128xf32>
    %307 = arith.addf %305, %306 : vector<16x128xf32>
    %308 = arith.addf %281, %307 : vector<16x128xf32>
    %cst_239 = arith.constant dense<0.000000e+00> : vector<16xf32>
    %309 = vector.multi_reduction <add>, %308, %cst_239 [1] : vector<16x128xf32> to vector<16xf32>
    %310 = vector.shape_cast %309 : vector<16xf32> to vector<16x1xf32>
    %cst_240 = arith.constant 1.280000e+02 : f32
    %311 = vector.broadcast %cst_240 : f32 to vector<16x1xf32>
    %312 = arith.divf %310, %311 : vector<16x1xf32>
    %313 = vector.broadcast %312 : vector<16x1xf32> to vector<16x128xf32>
    %314 = arith.subf %308, %313 : vector<16x128xf32>
    %315 = arith.mulf %314, %314 : vector<16x128xf32>
    %cst_241 = arith.constant dense<0.000000e+00> : vector<16xf32>
    %316 = vector.multi_reduction <add>, %315, %cst_241 [1] : vector<16x128xf32> to vector<16xf32>
    %317 = vector.shape_cast %316 : vector<16xf32> to vector<16x1xf32>
    %cst_242 = arith.constant 1.280000e+02 : f32
    %318 = vector.broadcast %cst_242 : f32 to vector<16x1xf32>
    %319 = arith.divf %317, %318 : vector<16x1xf32>
    %cst_243 = arith.constant 9.99999974E-6 : f32
    %320 = vector.broadcast %cst_243 : f32 to vector<16x1xf32>
    %321 = arith.addf %319, %320 : vector<16x1xf32>
    %322 = math.rsqrt %321 : vector<16x1xf32>
    %323 = vector.broadcast %322 : vector<16x1xf32> to vector<16x128xf32>
    %324 = arith.mulf %314, %323 : vector<16x128xf32>
    %325 = vector.broadcast %207 : vector<1x128xf32> to vector<16x128xf32>
    %326 = arith.mulf %324, %325 : vector<16x128xf32>
    %327 = vector.broadcast %209 : vector<1x128xf32> to vector<16x128xf32>
    %328 = arith.addf %326, %327 : vector<16x128xf32>
    %329 = vector.shape_cast %328 : vector<16x128xf32> to vector<2x8x128xf32>
    %c0_244 = arith.constant 0 : index
    %c0_245 = arith.constant 0 : index
    %c0_246 = arith.constant 0 : index
    %330 = vector.load %arg17[%c0_244, %c0_245, %c0_246] : memref<2x8x128xf32, #tpu.memory_space<vmem>>, vector<2x8x128xf32>
    tpu.vector_store %arg17[%c0_244, %c0_245, %c0_246], %329 {strides = array<i32>} : memref<2x8x128xf32, #tpu.memory_space<vmem>>, vector<2x8x128xf32>,
    return
  }
}

</mosaic_0001>

<bundles_post_ra>
// kernel: tpu_custom_call.1
= control target key start
LH: loop header
LB: loop body
LE: loop exit
PB: predicated region body
PF: predicated region fallthrough
CT: control target
= control target key end

     0   :  { %s3091_s0 = inlined_call_operand.hbm [shape: f32[2,8,128], index: 0, kind: input, shape index: {}]   ;;  %s3092_s1 = inlined_call_operand.hbm [shape: f32[2,8,128], index: 1, kind: input, shape index: {}]   ;;  %s3093_s2 = inlined_call_operand.hbm [shape: f32[2,8,128], index: 2, kind: input, shape index: {}]   ;;  %s3094_s3 = inlined_call_operand.vmem [shape: f32[8,128], index: 3, kind: input, shape index: {}]   ;;  %s3095_s4 = inlined_call_operand.hbm [shape: bf16[128,128], index: 4, kind: input, shape index: {}]   ;;  %s3096_s5 = inlined_call_operand.hbm [shape: bf16[2,128,384], index: 5, kind: input, shape index: {}]   ;;  %s3097_s6 = inlined_call_operand.hbm [shape: bf16[2,128,128], index: 6, kind: input, shape index: {}]   ;;  %s3098_s7 = inlined_call_operand.hbm [shape: bf16[2,128,512], index: 7, kind: input, shape index: {}]   ;;  %s3099_s8 = inlined_call_operand.hbm [shape: bf16[2,512,128], index: 8, kind: input, shape index: {}]   ;;  %s3100_s9 = inlined_call_operand.vmem [shape: f32[2,1,384], index: 9, kind: input, shape index: {}]   ;;  %s3101_s10 = inlined_call_operand.vmem [shape: f32[2,1,128], index: 10, kind: input, shape index: {}]   ;;  %s3102_s11 = inlined_call_operand.vmem [shape: f32[2,1,128], index: 11, kind: input, shape index: {}]   ;;  %s3103_s12 = inlined_call_operand.vmem [shape: f32[2,1,128], index: 12, kind: input, shape index: {}]   ;;  %s3104_s13 = inlined_call_operand.vmem [shape: f32[2,1,512], index: 13, kind: input, shape index: {}]   ;;  %s3105_s14 = inlined_call_operand.vmem [shape: f32[2,1,128], index: 14, kind: input, shape index: {}]   ;;  %s3106_s15 = inlined_call_operand.vmem [shape: f32[2,1,128], index: 15, kind: input, shape index: {}]   ;;  %s3107_s16 = inlined_call_operand.vmem [shape: f32[2,1,128], index: 16, kind: input, shape index: {}]   ;;  %s3108_s17 = inlined_call_operand.hbm [shape: f32[2,8,128], index: 17, kind: output, shape index: {}]  }
   0x1   :  { %3127 = sst [smem:[#allocation46_spill]] %s3091_s0 }
   0x2   :  { %3128 = sst [smem:[#allocation47_spill]] %s3092_s1 }
   0x3   :  { %3129 = sst [smem:[#allocation48_spill]] %s3107_s16 }
   0x4   :  { %3130 = sst [smem:[#allocation49_spill]] %s3108_s17 }
   0x5   :  { %22 = vsyncpa [#allocation8], 0 }
   0x6   :  { %23 = vsyncpa [#allocation11], 0 }
   0x7   :  { %24 = vsyncpa [#allocation14], 0 }
   0x8   :  { %25 = vsyncpa [#allocation9], 0  ;;  %s2343_s24 = smov [#allocation10]   ;;  %s2344_s26 = smov [#allocation7]  }
   0x9   :  { %s43_s25 = sshll.u32 %s2343_s24, 4  ;;  %s31_s27 = sshll.u32 %s2344_s26, 4  ;;  %s44_s25 = int_to_ptr.vmem [resolvable:$true] %s43_s25  ;;  %s2467_s27 = int_to_ptr.vmem [resolvable:$true] %s31_s27 }
   0xa   :  { %s3131_s0 = sld [smem:[#allocation47_spill]] }
  0x10   :  { %s2115_s30 = scalar_lea.hbm %s3131_s0, 256 }
  0x11   :  { %p2116_p0 = scmp.ne.s32.totalorder %s3131_s0, %s2115_s30  ;;  %p2119_p1 = scmp.lt.u32.totalorder %s2115_s30, %s3131_s0 }
  0x13   :  { %p2121_p2 = pnand %p2119_p1, %p2116_p0 }
  0x15   :  { %2124 = shalt.err (!%p2121_p2)
}
  0x16   :  { %s2125_s21 = scalar_lea.vmem %s44_s25, 256  ;;  %p2130_p4 = scmp.lt.s32.totalorder %s44_s25, %s44_s25 }
  0x17   :  { %p2126_p3 = scmp.ne.s32.totalorder %s44_s25, %s2125_s21  ;;  %p2131_p5 = scmp.lt.s32.totalorder %s2125_s21, %s2125_s21 }
  0x19   :  { %p2132_p6 = por %p2131_p5, %p2130_p4 }
  0x1b   :  { %p2133_p7 = pnand %p2132_p6, %p2126_p3 }
  0x1d   :  { %2136 = shalt.err (!%p2133_p7)
}
  0x1e   :  { %s3122_s22 = smov 128   ;;  %s3113_s23 = smov 8  }
  0x1f   :  { %49 = dma.hbm_to_vmem [thread:$0]  %s3131_s0, 256, %s44_s25, [#allocation11], %s3122_s22, %s3122_s22, %s3113_s23  }
  0x20   :  { %s3132_s30 = sld [smem:[#allocation46_spill]] }
  0x26   :  { %s2137_s18 = scalar_lea.hbm %s3132_s30, 256 }
  0x27   :  { %p2138_p8 = scmp.ne.s32.totalorder %s3132_s30, %s2137_s18  ;;  %p2141_p9 = scmp.lt.u32.totalorder %s2137_s18, %s3132_s30 }
  0x29   :  { %p2143_p10 = pnand %p2141_p9, %p2138_p8 }
  0x2b   :  { %2146 = shalt.err (!%p2143_p10)
}
  0x2c   :  { %s2147_s17 = scalar_lea.vmem %s2467_s27, 256  ;;  %p2152_p12 = scmp.lt.s32.totalorder %s2467_s27, %s2467_s27 }
  0x2d   :  { %p2148_p11 = scmp.ne.s32.totalorder %s2467_s27, %s2147_s17  ;;  %p2153_p13 = scmp.lt.s32.totalorder %s2147_s17, %s2147_s17 }
  0x2f   :  { %p2154_p0 = por %p2153_p13, %p2152_p12 }
  0x31   :  { %p2155_p1 = pnand %p2154_p0, %p2148_p11 }
  0x33   :  { %2158 = shalt.err (!%p2155_p1)
}
  0x34   :  { %37 = dma.hbm_to_vmem [thread:$0]  %s3132_s30, 256, %s2467_s27, [#allocation8], %s3122_s22, %s3122_s22, %s3113_s23  }
  0x35   :  { %s2347_s24 = smov [#allocation12]   ;;  %s2348_s28 = smov [#allocation13]  }
  0x36   :  { %s55_s26 = sshll.u32 %s2347_s24, 4  ;;  %s69_s29 = sshll.u32 %s2348_s28, 4  ;;  %s56_s26 = int_to_ptr.vmem [resolvable:$true] %s55_s26  ;;  %s2504_s29 = int_to_ptr.vmem [resolvable:$true] %s69_s29 }
  0x37   :  { %s2159_s19 = scalar_lea.hbm %s3093_s2, 256 }
  0x38   :  { %p2160_p2 = scmp.ne.s32.totalorder %s3093_s2, %s2159_s19  ;;  %p2163_p3 = scmp.lt.u32.totalorder %s2159_s19, %s3093_s2 }
  0x3a   :  { %p2165_p4 = pnand %p2163_p3, %p2160_p2 }
  0x3c   :  { %2168 = shalt.err (!%p2165_p4)
}
  0x3d   :  { %s2169_s27 = scalar_lea.vmem %s56_s26, 256  ;;  %p2174_p6 = scmp.lt.s32.totalorder %s56_s26, %s56_s26 }
  0x3e   :  { %p2170_p5 = scmp.ne.s32.totalorder %s56_s26, %s2169_s27  ;;  %p2175_p7 = scmp.lt.s32.totalorder %s2169_s27, %s2169_s27 }
  0x40   :  { %p2176_p8 = por %p2175_p7, %p2174_p6 }
  0x42   :  { %p2177_p9 = pnand %p2176_p8, %p2170_p5 }
  0x44   :  { %2180 = shalt.err (!%p2177_p9)
}
  0x45   :  { %61 = dma.hbm_to_vmem [thread:$0]  %s3093_s2, 256, %s56_s26, [#allocation11], %s3122_s22, %s3122_s22, %s3113_s23  }
  0x46   :  { %s2181_s16 = scalar_lea.hbm %s3095_s4, 1024 }
  0x47   :  { %p2182_p10 = scmp.ne.s32.totalorder %s3095_s4, %s2181_s16  ;;  %p2185_p11 = scmp.lt.u32.totalorder %s2181_s16, %s3095_s4 }
  0x49   :  { %p2187_p12 = pnand %p2185_p11, %p2182_p10 }
  0x4b   :  { %2190 = shalt.err (!%p2187_p12)
}
  0x4c   :  { %s2191_s1 = scalar_lea.vmem %s2504_s29, 1024  ;;  %p2196_p0 = scmp.lt.s32.totalorder %s2504_s29, %s2504_s29 }
  0x4d   :  { %p2192_p13 = scmp.ne.s32.totalorder %s2504_s29, %s2191_s1  ;;  %p2197_p1 = scmp.lt.s32.totalorder %s2191_s1, %s2191_s1 }
  0x4f   :  { %p2198_p2 = por %p2197_p1, %p2196_p0 }
  0x51   :  { %p2199_p3 = pnand %p2198_p2, %p2192_p13 }
  0x53   :  { %2202 = shalt.err (!%p2199_p3)
}
  0x54   :  { %s3124_s2 = smov 64   ;;  %s3117_s26 = smov 4  }
  0x55   :  { %75 = dma.hbm_to_vmem [thread:$0]  %s3095_s4, 1024, %s2504_s29, [#allocation14], %s3124_s2, %s3124_s2, %s3117_s26  }
  0x56   :  { %2319 = dma.done.wait [#allocation8], 256  }
  0x57   :  { %2320 = vsyncadd [#allocation8], 4294967040 }
  0x58   :  { %2321 = dma.done.wait [#allocation11], 512  }
  0x59   :  { %2322 = vsyncadd [#allocation11], 4294966784 }
  0x5a   :  { %2323 = dma.done.wait [#allocation14], 1024  }
  0x5b   :  { %2324 = vsyncadd [#allocation14], 4294966272  ;;  %s109_s27 = sld [smem:[#allocation0]]   ;;  %s2351_s30 = smov 384  }
  0x5c   :  { %121 = sst [smem:[#allocation17]] %s2351_s30  ;;  %s2352_s25 = smov 3  }
  0x5d   :  { %123 = sst [smem:[#allocation17 + $0x1]] %s2351_s30  ;;  %s2353_s4 = smov [#allocation2]  }
  0x5e   :  { %125 = sst [smem:[#allocation17 + $0x2]] %s2352_s25  ;;  %s117_s29 = sshll.u32 %s2353_s4, 4  ;;  %s118_s29 = int_to_ptr.vmem [resolvable:$true] %s117_s29 }
  0x5f   :  { %127 = sst [smem:[#allocation17 + $0x3]] %s3124_s2  ;;  %s3121_s0 = smov 2  }
  0x60   :  { %129 = sst [smem:[#allocation17 + $0x4]] %s3122_s22  ;;  %s3120_s16 = smov 192  }
  0x61   :  { %131 = sst [smem:[#allocation17 + $0x5]] %s3121_s0  ;;  %s1733_s24 = sshll.u32 %s109_s27, 26 }
  0x62   :  { %133 = sst [smem:[#allocation17 + $0x6]] %s3120_s16  ;;  %s2548_s28 = sadd.s32 134217728, %s1733_s24 }
  0x63   :  { %135 = sst [smem:[#allocation17 + $0x7]] %s3124_s2  ;;  %s2356_s18 = smov [#allocation6]  }
  0x64   :  { %137 = sst [smem:[#allocation17 + $0x8]] %s3117_s26  ;;  %s2357_s17 = smov [#allocation16]  }
  0x65   :  { %139 = dma.general %s3096_s5, 3072, %s118_s29, %s2356_s18, %s2357_s17, [#allocation17], %s2548_s28, 0  }
  0x66   :  { %s3115_s20 = smov 512   ;;  %172 = sst [smem:[#allocation23 + $0x2]] %s3117_s26 }
  0x67   :  { %168 = sst [smem:[#allocation23]] %s3115_s20  ;;  %s2359_s21 = smov [#allocation3]  }
  0x68   :  { %170 = sst [smem:[#allocation23 + $0x1]] %s3115_s20  ;;  %s148_s27 = sshll.u32 %s2359_s21, 4  ;;  %s2560_s27 = int_to_ptr.vmem [resolvable:$true] %s148_s27 }
  0x69   :  { %174 = sst [smem:[#allocation23 + $0x3]] %s3124_s2  ;;  %s2360_s4 = smov [#allocation4]  }
  0x6a   :  { %176 = sst [smem:[#allocation23 + $0x4]] %s3122_s22  ;;  %s2564_s24 = sshll.u32 %s2360_s4, 4  ;;  %s165_s24 = int_to_ptr.vmem [resolvable:$true] %s2564_s24 }
  0x6b   :  { %178 = sst [smem:[#allocation23 + $0x5]] %s3121_s0  ;;  %s3114_s29 = smov 256  }
  0x6c   :  { %180 = sst [smem:[#allocation23 + $0x6]] %s3114_s29  ;;  %s2573_s19 = scalar_lea.hbm %s3097_s6, 1024 }
  0x6d   :  { %182 = sst [smem:[#allocation23 + $0x7]] %s3124_s2  ;;  %p2204_p4 = scmp.ne.s32.totalorder %s3097_s6, %s2573_s19 }
  0x6e   :  { %184 = sst [smem:[#allocation23 + $0x8]] %s3117_s26  ;;  %s2582_s29 = scalar_lea.hbm %s3097_s6, 2048 }
  0x6f   :  { %p2206_p5 = scmp.lt.u32.totalorder %s2582_s29, %s2573_s19  ;;  %p2207_p6 = scmp.lt.u32.totalorder %s2573_s19, %s3097_s6 }
  0x71   :  { %p2208_p7 = por %p2207_p6, %p2206_p5 }
  0x73   :  { %p2209_p8 = pnand %p2208_p7, %p2204_p4 }
  0x75   :  { %2212 = shalt.err (!%p2209_p8)  }
  0x76   :  { %s2213_s23 = scalar_lea.vmem %s2560_s27, 1024  ;;  %s3119_s21 = scalar_lea.vmem %s2560_s27, 2048 }
  0x77   :  { %p2214_p9 = scmp.ne.s32.totalorder %s2560_s27, %s2213_s23  ;;  %p2218_p10 = scmp.lt.s32.totalorder %s2560_s27, %s2560_s27 }
  0x78   :  { %p2219_p11 = scmp.lt.s32.totalorder %s3119_s21, %s2213_s23 }
  0x7a   :  { %p2220_p12 = por %p2219_p11, %p2218_p10 }
  0x7c   :  { %p2221_p13 = pnand %p2220_p12, %p2214_p9 }
  0x7e   :  { %2224 = shalt.err (!%p2221_p13)  }
  0x7f   :  { %151 = dma.hbm_to_vmem [thread:$0]  %s3097_s6, 1024, %s2560_s27, [#allocation6 + $0x1] }
  0x80   :  { %s2362_s18 = smov [#allocation6 + $0x2]   ;;  %s2363_s17 = smov [#allocation22]  }
  0x81   :  { %186 = dma.general %s3098_s7, 4096, %s165_s24, %s2362_s18, %s2363_s17, [#allocation23], %s2548_s28, 0  }
  0x82   :  { %217 = sst [smem:[#allocation27]] %s2351_s30  ;;  %s2364_s23 = smov [#allocation5]  }
  0x83   :  { %219 = sst [smem:[#allocation27 + $0x1]] %s2351_s30  ;;  %s195_s21 = sshll.u32 %s2364_s23, 4  ;;  %s2616_s21 = int_to_ptr.vmem [resolvable:$true] %s195_s21 }
  0x84   :  { %221 = sst [smem:[#allocation27 + $0x2]] %s2352_s25  ;;  %s199_s16 = scalar_lea.hbm %s3096_s5, 3072 }
  0x85   :  { %223 = sst [smem:[#allocation27 + $0x3]] %s3124_s2  ;;  %s2365_s26 = smov [#allocation2 + $0xc0]  }
  0x86   :  { %225 = sst [smem:[#allocation27 + $0x4]] %s3122_s22  ;;  %s213_s24 = sshll.u32 %s2365_s26, 4  ;;  %s214_s24 = int_to_ptr.vmem [resolvable:$true] %s213_s24 }
  0x87   :  { %227 = sst [smem:[#allocation27 + $0x5]] %s3121_s0  ;;  %s3133_s18 = smov 192  }
  0x88   :  { %229 = sst [smem:[#allocation27 + $0x6]] %s3133_s18  ;;  %s3134_s30 = smov 4  }
  0x89   :  { %231 = sst [smem:[#allocation27 + $0x7]] %s3124_s2  ;;  %s2630_s1 = scalar_lea.hbm %s3099_s8, 4096 }
  0x8a   :  { %233 = sst [smem:[#allocation27 + $0x8]] %s3134_s30  ;;  %p2226_p0 = scmp.ne.s32.totalorder %s3099_s8, %s2630_s1 }
  0x8b   :  { %s2639_s18 = scalar_lea.hbm %s3099_s8, 8192  ;;  %p2229_p2 = scmp.lt.u32.totalorder %s2630_s1, %s3099_s8 }
  0x8c   :  { %p2228_p1 = scmp.lt.u32.totalorder %s2639_s18, %s2630_s1 }
  0x8e   :  { %p2230_p3 = por %p2229_p2, %p2228_p1 }
  0x90   :  { %p2231_p4 = pnand %p2230_p3, %p2226_p0 }
  0x92   :  { %2234 = shalt.err (!%p2231_p4)  }
  0x93   :  { %s2235_s20 = scalar_lea.vmem %s2616_s21, 4096  ;;  %s3126_s4 = scalar_lea.vmem %s2616_s21, 8192 }
  0x94   :  { %p2236_p7 = scmp.ne.s32.totalorder %s2616_s21, %s2235_s20  ;;  %p2240_p8 = scmp.lt.s32.totalorder %s2616_s21, %s2616_s21 }
  0x95   :  { %p2241_p9 = scmp.lt.s32.totalorder %s3126_s4, %s2235_s20 }
  0x97   :  { %p2242_p10 = por %p2241_p9, %p2240_p8 }
  0x99   :  { %p2243_p11 = pnand %p2242_p10, %p2236_p7 }
  0x9b   :  { %2246 = shalt.err (!%p2243_p11)  }
  0x9c   :  { %198 = dma.hbm_to_vmem [thread:$0]  %s3099_s8, 4096, %s2616_s21, [#allocation6 + $0x3] }
  0x9d   :  { %s2366_s25 = smov [#allocation6 + $0x4]   ;;  %s2367_s17 = smov [#allocation26]  }
  0x9e   :  { %235 = dma.general %s199_s16, 3072, %s214_s24, %s2366_s25, %s2367_s17, [#allocation27], %s2548_s28, 0  }
  0x9f   :  { %s3135_s2 = smov 512   ;;  %272 = sst [smem:[#allocation31 + $0x2]] %s3134_s30 }
  0xa0   :  { %268 = sst [smem:[#allocation31]] %s3135_s2  ;;  %s2368_s20 = smov [#allocation3 + $0x40]  }
  0xa1   :  { %270 = sst [smem:[#allocation31 + $0x1]] %s3135_s2  ;;  %s246_s0 = sshll.u32 %s2368_s20, 4  ;;  %s247_s0 = int_to_ptr.vmem [resolvable:$true] %s246_s0 }
  0xa2   :  { %s3136_s26 = smov 64   ;;  %s3137_s22 = smov 128  }
  0xa3   :  { %274 = sst [smem:[#allocation31 + $0x3]] %s3136_s26  ;;  %s250_s24 = scalar_lea.hbm %s3098_s7, 4096 }
  0xa4   :  { %276 = sst [smem:[#allocation31 + $0x4]] %s3137_s22  ;;  %s3138_s25 = smov 2  }
  0xa5   :  { %278 = sst [smem:[#allocation31 + $0x5]] %s3138_s25  ;;  %s3139_s2 = smov 256  }
  0xa6   :  { %280 = sst [smem:[#allocation31 + $0x6]] %s3139_s2  ;;  %s2369_s17 = smov [#allocation4 + $0x100]  }
  0xa7   :  { %s264_s23 = sshll.u32 %s2369_s17, 4  ;;  %282 = sst [smem:[#allocation31 + $0x7]] %s3136_s26  ;;  %s265_s23 = int_to_ptr.vmem [resolvable:$true] %s264_s23 }
  0xa8   :  { %284 = sst [smem:[#allocation31 + $0x8]] %s3134_s30  ;;  %p2248_p12 = scmp.ne.s32.totalorder %s2573_s19, %s2582_s29 }
  0xa9   :  { %p2251_p13 = scmp.lt.u32.totalorder %s2582_s29, %s2582_s29 }
  0xab   :  { %p2252_p0 = por %p2251_p13, %p2207_p6 }
  0xad   :  { %p2254_p3 = por %p2252_p0, %p2206_p5 }
  0xaf   :  { %p2255_p4 = pnand %p2254_p3, %p2248_p12 }
  0xb1   :  { %2258 = shalt.err (!%p2255_p4)  }
  0xb2   :  { %s2259_s7 = scalar_lea.vmem %s247_s0, 1024  ;;  %p2264_p8 = scmp.lt.s32.totalorder %s247_s0, %s2560_s27 }
  0xb3   :  { %p2260_p7 = scmp.ne.s32.totalorder %s247_s0, %s2259_s7  ;;  %s3140_s26 = scalar_lea.vmem %s2560_s27, 2048 }
  0xb4   :  { %p2265_p9 = scmp.lt.s32.totalorder %s3140_s26, %s2259_s7 }
  0xb6   :  { %p2266_p10 = por %p2265_p9, %p2264_p8 }
  0xb8   :  { %p2267_p11 = pnand %p2266_p10, %p2260_p7 }
  0xba   :  { %2270 = shalt.err (!%p2267_p11)  }
  0xbb   :  { %249 = dma.hbm_to_vmem [thread:$0]  %s2573_s19, 1024, %s247_s0, [#allocation6 + $0x5] }
  0xbc   :  { %s2370_s6 = smov [#allocation6 + $0x6]   ;;  %s2371_s29 = smov [#allocation30]  }
  0xbd   :  { %286 = dma.general %s250_s24, 4096, %s265_s23, %s2370_s6, %s2371_s29, [#allocation31], %s2548_s28, 0  }
  0xbe   :  { %s2372_s30 = smov [#allocation5 + $0x100]   ;;  %p2273_p5 = scmp.ne.s32.totalorder %s2630_s1, %s2639_s18 }
  0xbf   :  { %s297_s4 = sshll.u32 %s2372_s30, 4  ;;  %p2276_p6 = scmp.lt.u32.totalorder %s2639_s18, %s2639_s18  ;;  %s298_s4 = int_to_ptr.vmem [resolvable:$true] %s297_s4 }
  0xc1   :  { %p2277_p12 = por %p2276_p6, %p2229_p2 }
  0xc3   :  { %p2279_p13 = por %p2277_p12, %p2228_p1 }
  0xc5   :  { %p2280_p0 = pnand %p2279_p13, %p2273_p5 }
  0xc7   :  { %2283 = shalt.err (!%p2280_p0)  }
  0xc8   :  { %s2284_s16 = scalar_lea.vmem %s298_s4, 4096  ;;  %p2289_p4 = scmp.lt.s32.totalorder %s298_s4, %s2616_s21 }
  0xc9   :  { %p2285_p3 = scmp.ne.s32.totalorder %s298_s4, %s2284_s16  ;;  %s3141_s28 = scalar_lea.vmem %s2616_s21, 8192 }
  0xca   :  { %p2290_p7 = scmp.lt.s32.totalorder %s3141_s28, %s2284_s16 }
  0xcc   :  { %p2291_p8 = por %p2290_p7, %p2289_p4 }
  0xce   :  { %p2292_p9 = pnand %p2291_p8, %p2285_p3 }
  0xd0   :  { %2295 = shalt.err (!%p2292_p9)  }
  0xd1   :  { %300 = dma.hbm_to_vmem [thread:$0]  %s2630_s1, 4096, %s298_s4, [#allocation6 + $0x7]  ;;  %v301_v0 = vld [vmem:[#allocation7] sm:$0xff]  ;;  %v302_v1 = vld [vmem:[#allocation7 + $0x8] sm:$0xff]  ;;  %v303_v2 = vld [vmem:[#allocation10] sm:$0xff] }
  0xd2   :  { %v304_v3 = vld [vmem:[#allocation10 + $0x8] sm:$0xff]  ;;  %v305_v4 = vadd.f32 %v303_v2, %v301_v0  ;;  %v307_v5 = vld [vmem:[#allocation12] sm:$0xff]  ;;  %v308_v6 = vld [vmem:[#allocation12 + $0x8] sm:$0xff]  ;;  %s3142_s4 = sld [smem:[#allocation48_spill]] }
  0xd3   :  { %v306_v7 = vadd.f32 %v304_v3, %v302_v1  ;;  %v311_v8 = vld [vmem:[%s3094_s3] sm:$0xff]  ;;  %v2719_v9 = vld [vmem:[#allocation13] sm:$0xf]  ;;  %v315_v10 = vld [vmem:[#allocation13 + $0x4] sm:$0xf] }
  0xd4   :  { %v309_v11 = vadd.f32 %v307_v5, %v305_v4  ;;  %v2721_v12 = vld [vmem:[#allocation13 + $0x8] sm:$0xf]  ;;  %v2723_v13 = vld [vmem:[#allocation13 + $0xc] sm:$0xf]  ;;  %v2725_v14 = vld [vmem:[#allocation13 + $0x10] sm:$0xf] }
  0xd5   :  { %v310_v15 = vadd.f32 %v308_v6, %v306_v7  ;;  %v2727_v16 = vld [vmem:[#allocation13 + $0x14] sm:$0xf]  ;;  %v2729_v17 = vld [vmem:[#allocation13 + $0x18] sm:$0xf]  ;;  %v2731_v18 = vld [vmem:[#allocation13 + $0x1c] sm:$0xf] }
  0xd6   :  { %v2733_v19 = vadd.f32 %v311_v8, %v309_v11  ;;  %v2735_v20 = vld [vmem:[#allocation13 + $0x20] sm:$0xf]  ;;  %v2737_v21 = vld [vmem:[#allocation13 + $0x24] sm:$0xf]  ;;  %v2739_v22 = vld [vmem:[#allocation13 + $0x28] sm:$0xf] }
  0xd7   :  { %v2741_v23 = vadd.f32 %v311_v8, %v310_v15  ;;  %v2743_v24 = vld [vmem:[#allocation13 + $0x2c] sm:$0xf]  ;;  %v2745_v25 = vld [vmem:[#allocation13 + $0x30] sm:$0xf]  ;;  %v2747_v26 = vld [vmem:[#allocation13 + $0x34] sm:$0xf] }
  0xd8   :  { %v2749_v27 = vld [vmem:[#allocation13 + $0x38] sm:$0xf]  ;;  %v2751_v28 = vld [vmem:[#allocation13 + $0x3c] sm:$0xf]  ;;  %v2756_v29 = vld [vmem:[%s3100_s9] sm:$0x7] }
  0xd9   :  { %v2761_v30 = vld [vmem:[%s3101_s10] ss:$0 sm:$0xff] }
  0xda   :  { %v2766_v31 = vld [vmem:[%s3102_s11] ss:$0 sm:$0xff] }
  0xdb   :  { %v2771_v32 = vld [vmem:[%s3103_s12] ss:$0 sm:$0xff] }
  0xdc   :  { %v2776_v33 = vld [vmem:[%s3104_s13] sm:$0xf] }
  0xdd   :  { %v2781_v34 = vld [vmem:[%s3105_s14] ss:$0 sm:$0xff] }
  0xde   :  { %v2786_v35 = vld [vmem:[%s3106_s15] ss:$0 sm:$0xff] }
  0xdf   :  { %v2791_v36 = vld [vmem:[%s3142_s4] ss:$0 sm:$0xff] }
  0xe0   :  { %2325 = dma.done.wait [#allocation6], 3072 }
  0xe1   :  { %2326 = vsyncadd [#allocation6], 4294964224  ;;  %v2373_v37 = vmov 0   ;;  %v344_v38 = vld [vmem:[#allocation2 + $0x8] sm:$0xff]  ;;  %v343_v39 = vld [vmem:[#allocation2] sm:$0xff]  ;;  %v2795_v54 = vcombine.low %v2719_v9, %v315_v10  ;;  %v342_v55 = vpack.c.bf16 %v2741_v23, %v2733_v19  ;;  %v2802_v56 = vcombine.low %v2721_v12, %v2723_v13 }
  0xe2   :  { %415 = vmatprep.mubr.bf16.mxu0 %v2373_v37  ;;  %v347_v40 = vld [vmem:[#allocation2 + $0x20] sm:$0xff]  ;;  %383 = vmatprep.subr.bf16.mxu0 %v344_v38  ;;  %v346_v41 = vld [vmem:[#allocation2 + $0x18] sm:$0xff]  ;;  %v349_v43 = vld [vmem:[#allocation2 + $0x30] sm:$0xff]  ;;  %v2808_v57 = vcombine.low %v2725_v14, %v2727_v16  ;;  %v2814_v58 = vcombine.low %v2729_v17, %v2731_v18  ;;  %v2820_v59 = vcombine.low %v2735_v20, %v2737_v21  ;;  %v2374_v63 = vmov 0.0  }
  0xe3   :  { %384 = vmatpush1.bf16.msra.mxu0 %v343_v39  ;;  %v350_v42 = vld [vmem:[#allocation2 + $0x38] sm:$0xff]  ;;  %v353_v44 = vld [vmem:[#allocation2 + $0x50] sm:$0xff]  ;;  %v352_v45 = vld [vmem:[#allocation2 + $0x48] sm:$0xff]  ;;  %v2826_v60 = vcombine.low %v2739_v22, %v2743_v24  ;;  %v2833_v61 = vcombine.low %v2745_v25, %v2747_v26  ;;  %v2839_v62 = vcombine.low %v2749_v27, %v2751_v28  ;;  %1921 = vmatprep.subr.bf16.mxu1 %v2374_v63  ;;  %vm2375_vm0 = vmmov 0  }
  0xe4   :  { %385 = vmatprep.subr.bf16.mxu0 %v347_v40  ;;  %v356_v46 = vld [vmem:[#allocation2 + $0x68] sm:$0xff]  ;;  %v355_v47 = vld [vmem:[#allocation2 + $0x60] sm:$0xff]  ;;  %v358_v49 = vld [vmem:[#allocation2 + $0x78] sm:$0xff]  ;;  %1937 = vmatprep.mubr.msk.bf16.mxu1 %vm2375_vm0, %v2374_v63  ;;  %v368_v8 = vlaneseq }
  0xe5   :  { %v359_v48 = vld [vmem:[#allocation2 + $0x80] sm:$0xff]  ;;  %v362_v50 = vld [vmem:[#allocation2 + $0x98] sm:$0xff]  ;;  %v361_v51 = vld [vmem:[#allocation2 + $0x90] sm:$0xff] }
  0xe6   :  { %v365_v52 = vld [vmem:[#allocation2 + $0xb0] sm:$0xff]  ;;  %v364_v53 = vld [vmem:[#allocation2 + $0xa8] sm:$0xff]  ;;  %v351_v2 = vld [vmem:[#allocation2 + $0x40] sm:$0xff]  ;;  %v2853_v9 = vshrl.u32 %v368_v8, 7 }
  0xe7   :  { %386 = vmatpush1.bf16.msra.mxu0 %v346_v41  ;;  %v345_v0 = vld [vmem:[#allocation2 + $0x10] sm:$0xff]  ;;  %v348_v1 = vld [vmem:[#allocation2 + $0x28] sm:$0xff]  ;;  %v354_v3 = vld [vmem:[#allocation2 + $0x58] sm:$0xff] }
  0xe8   :  { %387 = vmatprep.subr.bf16.mxu0 %v350_v42  ;;  %1922 = vmatpush3.bf16.msra.mxu1 %v345_v0  ;;  %v357_v4 = vld [vmem:[#allocation2 + $0x70] sm:$0xff]  ;;  %v360_v5 = vld [vmem:[#allocation2 + $0x88] sm:$0xff]  ;;  %v363_v6 = vld [vmem:[#allocation2 + $0xa0] sm:$0xff]  ;;  %v2856_v10 = vsub.s32 0, %v2853_v9  ;;  %v2859_v11 = vsub.s32 1, %v2853_v9  ;;  %v2866_v8 = vsub.s32 2, %v2853_v9 }
  0xe9   :  { %1923 = vmatprep.subr.bf16.mxu1 %v2374_v63  ;;  %v366_v7 = vld [vmem:[#allocation2 + $0xb8] sm:$0xff] }
  0xea   :  { %v371_v12 = vrot.slane %v2756_v29, %v2856_v10  ;;  %v375_v13 = vrot.slane %v2756_v29, %v2859_v11 }
  0xeb   :  { %388 = vmatpush1.bf16.msra.mxu0 %v349_v43 }
  0xec   :  { %389 = vmatprep.subr.bf16.mxu0 %v353_v44  ;;  %1924 = vmatpush3.bf16.msra.mxu1 %v348_v1 }
  0xed   :  { %1925 = vmatprep.subr.bf16.mxu1 %v2374_v63 }
  0xef   :  { %390 = vmatpush1.bf16.msra.mxu0 %v352_v45 }
  0xf0   :  { %391 = vmatprep.subr.bf16.mxu0 %v356_v46  ;;  %1926 = vmatpush3.bf16.msra.mxu1 %v351_v2 }
  0xf1   :  { %1927 = vmatprep.subr.bf16.mxu1 %v2374_v63 }
  0xf3   :  { %392 = vmatpush1.bf16.msra.mxu0 %v355_v47 }
  0xf4   :  { %393 = vmatprep.subr.bf16.mxu0 %v359_v48  ;;  %1928 = vmatpush3.bf16.msra.mxu1 %v354_v3 }
  0xf5   :  { %1929 = vmatprep.subr.bf16.mxu1 %v2374_v63 }
  0xf7   :  { %394 = vmatpush1.bf16.msra.mxu0 %v358_v49 }
  0xf8   :  { %395 = vmatprep.subr.bf16.mxu0 %v362_v50  ;;  %1930 = vmatpush3.bf16.msra.mxu1 %v357_v4 }
  0xf9   :  { %1931 = vmatprep.subr.bf16.mxu1 %v2374_v63 }
  0xfb   :  { %396 = vmatpush1.bf16.msra.mxu0 %v361_v51 }
  0xfc   :  { %397 = vmatprep.subr.bf16.mxu0 %v365_v52  ;;  %1932 = vmatpush3.bf16.msra.mxu1 %v360_v5 }
  0xfd   :  { %1933 = vmatprep.subr.bf16.mxu1 %v2374_v63 }
  0xff   :  { %398 = vmatpush1.bf16.msra.mxu0 %v364_v53 }
 0x100   :  { %1941 = vmatprep.subr.bf16.mxu0 %v2795_v54  ;;  %1934 = vmatpush3.bf16.msra.mxu1 %v363_v6 }
 0x101   :  { %1935 = vmatprep.subr.bf16.mxu1 %v2374_v63 }
 0x102   :  { %416 = vmatmul.mubr.bf16.vlgmr.msra.gmra.mrb[0].mxu0 %v342_v55 }
 0x103   :  { %1942 = vmatpush3.bf16.msra.mxu0 %v2795_v54 }
 0x104   :  { %1943 = vmatprep.subr.bf16.mxu0 %v2802_v56  ;;  %1936 = vmatpush3.bf16.msra.mxu1 %v366_v7 }
 0x107   :  { %1944 = vmatpush3.bf16.msra.mxu0 %v2802_v56  ;;  %1938 = vmatmul.mubr.bf16.vlgmr.msra.gmra.mrb[0].mxu1 %v342_v55 }
 0x108   :  { %1945 = vmatprep.subr.bf16.mxu0 %v2808_v57 }
 0x10b   :  { %1946 = vmatpush3.bf16.msra.mxu0 %v2808_v57 }
 0x10c   :  { %1947 = vmatprep.subr.bf16.mxu0 %v2814_v58 }
 0x10f   :  { %1948 = vmatpush3.bf16.msra.mxu0 %v2814_v58 }
 0x110   :  { %1949 = vmatprep.subr.bf16.mxu0 %v2820_v59 }
 0x113   :  { %1950 = vmatpush3.bf16.msra.mxu0 %v2820_v59 }
 0x114   :  { %1951 = vmatprep.subr.bf16.mxu0 %v2826_v60 }
 0x117   :  { %1952 = vmatpush3.bf16.msra.mxu0 %v2826_v60 }
 0x118   :  { %1953 = vmatprep.subr.bf16.mxu0 %v2833_v61 }
 0x11b   :  { %1954 = vmatpush3.bf16.msra.mxu0 %v2833_v61 }
 0x11c   :  { %1955 = vmatprep.subr.bf16.mxu0 %v2839_v62 }
 0x11f   :  { %1956 = vmatpush3.bf16.msra.mxu0 %v2839_v62 }
 0x1d5   :  { %v417_v14 = vpop.f32.mrb[0].mxu0 }
 0x1d6   :  { %v418_v15 = vadd.f32 %v417_v14, %v371_v12  ;;  %v419_v16 = vpop.f32.mrb[1].mxu0 }
 0x1d7   :  { %v420_v17 = vadd.f32 %v419_v16, %v375_v13  ;;  %v421_v18 = vpop.f32.mrb[2].mxu0 }
 0x1d8   :  { %v422_v20 = vadd.f32 %v421_v18, %v371_v12  ;;  %v423_v21 = vpop.f32.mrb[3].mxu0  ;;  %v379_v12 = vrot.slane %v2756_v29, %v2866_v8 }
 0x1d9   :  { %v467_v22 = vmul.f32 %v420_v17, %v418_v15  ;;  %v424_v24 = vadd.f32 %v423_v21, %v375_v13 }
 0x1da   :  { %v469_v25 = vmul.f32 %v422_v20, %v420_v17  ;;  %v460_v39 = vpop.f32.mrb[0].mxu1 }
 0x1db   :  { %v468_v26 = vmul.f32 %v424_v24, %v418_v15  ;;  %v470_v27 = vmul.f32 %v424_v24, %v422_v20  ;;  %v1939_v40 = vpop.f32.mrb[1].mxu1  ;;  %v461_v13 = vadd.f32 %v460_v39, %v379_v12 }
 0x1dc   :  { %v463_v41 = vpop.f32.mrb[2].mxu1 }
 0x1dd   :  { %v472_v28 = vpack.c.bf16 %v470_v27, %v469_v25  ;;  %v471_v38 = vpack.c.bf16 %v468_v26, %v467_v22  ;;  %v1940_v42 = vpop.f32.mrb[3].mxu1  ;;  %v464_v14 = vadd.f32 %v463_v41, %v379_v12 }
 0x1df   :  { %1957 = vmatprep.mubr.bf16.mxu0 %v471_v38 }
 0x1e0   :  { %1958 = vmatmul.mubr.bf16.vlgmr.msra.gmra.mrb[4].mxu0 %v472_v28 }
 0x2b3   :  { %v1959_v43 = vpop.f32.mrb[4].mxu0 }
 0x2b4   :  { %v555_v44 = vpop.f32.mrb[5].mxu0 }
 0x2b5   :  { %v1960_v45 = vpop.f32.mrb[6].mxu0 }
 0x2b6   :  { %v571_v46 = vmax.f32 %v1959_v43, %v1960_v45  ;;  %v558_v47 = vpop.f32.mrb[7].mxu0 }
 0x2b7   :  { %v570_v48 = vmax.f32 %v555_v44, %v558_v47 }
 0x2b8   :  { %v574_v49 = vsub.f32 %v1959_v43, %v571_v46  ;;  %v575_v50 = vsub.f32 %v1960_v45, %v571_v46 }
 0x2b9   :  { %v572_v51 = vsub.f32 %v555_v44, %v570_v48  ;;  %v573_v52 = vsub.f32 %v558_v47, %v570_v48 }
 0x2ba   :  { %v580_v53 = vmul.f32 1.442695, %v574_v49  ;;  %v582_v55 = vmul.f32 1.442695, %v575_v50 }
 0x2bb   :  { %v576_v0 = vmul.f32 1.442695, %v572_v51  ;;  %v578_v1 = vmul.f32 1.442695, %v573_v52 }
 0x2bc   :  { %2075 = vpow2.f32 %v580_v53 }
 0x2bd   :  { %2077 = vpow2.f32 %v582_v55 }
 0x2be   :  { %2079 = vpow2.f32 %v576_v0 }
 0x2bf   :  { %2081 = vpow2.f32 %v578_v1 }
 0x2c6   :  { %v2076_v2 = vpop.eup %2075 }
 0x2c7   :  { %v2078_v3 = vpop.eup %2077 }
 0x2c8   :  { %v2080_v4 = vpop.eup %2079  ;;  %v585_v5 = vadd.f32 %v2078_v3, %v2076_v2 }
 0x2c9   :  { %v2082_v6 = vpop.eup %2081 }
 0x2ca   :  { %2083 = vrcp.f32 %v585_v5  ;;  %v584_v7 = vadd.f32 %v2082_v6, %v2080_v4 }
 0x2cc   :  { %2085 = vrcp.f32 %v584_v7 }
 0x2d4   :  { %v2084_v15 = vpop.eup %2083 }
 0x2d5   :  { %v590_v16 = vmul.f32 %v2084_v15, %v2076_v2  ;;  %v591_v17 = vmul.f32 %v2084_v15, %v2078_v3 }
 0x2d6   :  { %v2086_v18 = vpop.eup %2085 }
 0x2d7   :  { %v588_v20 = vmul.f32 %v2086_v18, %v2080_v4  ;;  %v594_v21 = vmul.f32 %v590_v16, %v461_v13  ;;  %v589_v22 = vmul.f32 %v2086_v18, %v2082_v6  ;;  %v595_v24 = vmul.f32 %v591_v17, %v464_v14 }
 0x2d9   :  { %v592_v25 = vmul.f32 %v588_v20, %v461_v13  ;;  %v593_v26 = vmul.f32 %v589_v22, %v464_v14  ;;  %v597_v27 = vadd.f32 %v595_v24, %v594_v21 }
 0x2db   :  { %v596_v28 = vadd.f32 %v593_v26, %v592_v25 }
 0x2dc   :  { %2327 = dma.done.wait [#allocation6 + $0x1], 1024 }
 0x2dd   :  { %2328 = vsyncadd [#allocation6 + $0x1], 4294966272  ;;  %1961 = vmatprep.subr.bf16.mxu1 %v2374_v63  ;;  %1977 = vmatprep.mubr.msk.bf16.mxu1 %vm2375_vm0, %v2374_v63  ;;  %v602_v29 = vld [vmem:[#allocation3] sm:$0xff]  ;;  %v603_v38 = vld [vmem:[#allocation3 + $0x8] sm:$0xff]  ;;  %v601_v45 = vpack.c.bf16 %v597_v27, %v596_v28 }
 0x2de   :  { %1962 = vmatpush3.bf16.msra.mxu1 %v602_v29  ;;  %v604_v39 = vld [vmem:[#allocation3 + $0x10] sm:$0xff]  ;;  %v605_v40 = vld [vmem:[#allocation3 + $0x18] sm:$0xff]  ;;  %v606_v41 = vld [vmem:[#allocation3 + $0x20] sm:$0xff] }
 0x2df   :  { %1963 = vmatprep.subr.bf16.mxu1 %v2374_v63  ;;  %v607_v42 = vld [vmem:[#allocation3 + $0x28] sm:$0xff]  ;;  %v608_v43 = vld [vmem:[#allocation3 + $0x30] sm:$0xff]  ;;  %v609_v44 = vld [vmem:[#allocation3 + $0x38] sm:$0xff] }
 0x2e2   :  { %1964 = vmatpush3.bf16.msra.mxu1 %v603_v38 }
 0x2e3   :  { %1965 = vmatprep.subr.bf16.mxu1 %v2374_v63 }
 0x2e6   :  { %1966 = vmatpush3.bf16.msra.mxu1 %v604_v39 }
 0x2e7   :  { %1967 = vmatprep.subr.bf16.mxu1 %v2374_v63 }
 0x2ea   :  { %1968 = vmatpush3.bf16.msra.mxu1 %v605_v40 }
 0x2eb   :  { %1969 = vmatprep.subr.bf16.mxu1 %v2374_v63 }
 0x2ee   :  { %1970 = vmatpush3.bf16.msra.mxu1 %v606_v41 }
 0x2ef   :  { %1971 = vmatprep.subr.bf16.mxu1 %v2374_v63 }
 0x2f2   :  { %1972 = vmatpush3.bf16.msra.mxu1 %v607_v42 }
 0x2f3   :  { %1973 = vmatprep.subr.bf16.mxu1 %v2374_v63 }
 0x2f6   :  { %1974 = vmatpush3.bf16.msra.mxu1 %v608_v43 }
 0x2f7   :  { %1975 = vmatprep.subr.bf16.mxu1 %v2374_v63 }
 0x2fa   :  { %1976 = vmatpush3.bf16.msra.mxu1 %v609_v44 }
 0x2fd   :  { %1978 = vmatmul.mubr.bf16.vlgmr.msra.gmra.mrb[4].mxu1 %v601_v45 }
 0x3d0   :  { %v650_v46 = vpop.f32.mrb[4].mxu1 }
 0x3d1   :  { %v651_v47 = vadd.f32 %v2761_v30, %v650_v46  ;;  %v1979_v48 = vpop.f32.mrb[5].mxu1 }
 0x3d2   :  { %v653_v49 = vpop.f32.mrb[6].mxu1 }
 0x3d3   :  { %v657_v50 = vadd.f32 %v651_v47, %v2733_v19  ;;  %v654_v51 = vadd.f32 %v2761_v30, %v653_v49  ;;  %v1980_v52 = vpop.f32.mrb[7].mxu1 }
 0x3d5   :  { %659 = vadd.xlane.f32.xlu0 %v657_v50  ;;  %v658_v53 = vadd.f32 %v654_v51, %v2741_v23 }
 0x3d9   :  { %661 = vadd.xlane.f32.xlu0 %v658_v53 }
 0x462   :  { %v660_v55 = vpop.xlane.xlu0 %659 }
 0x463   :  { %v664_v0 = vmul.f32 0.0078125, %v660_v55 }
 0x465   :  { %v666_v1 = vsub.f32 %v657_v50, %v664_v0 }
 0x466   :  { %v662_v2 = vpop.xlane.xlu0 %661 }
 0x467   :  { %v665_v3 = vmul.f32 0.0078125, %v662_v2  ;;  %v668_v4 = vmul.f32 %v666_v1, %v666_v1 }
 0x469   :  { %v667_v5 = vsub.f32 %v658_v53, %v665_v3  ;;  %670 = vadd.xlane.f32.xlu1 %v668_v4 }
 0x46b   :  { %v669_v6 = vmul.f32 %v667_v5, %v667_v5 }
 0x46d   :  { %672 = vadd.xlane.f32.xlu1 %v669_v6 }
 0x4f6   :  { %v671_v7 = vpop.xlane.xlu1 %670 }
 0x4f7   :  { %v674_v12 = vmul.f32 0.0078125, %v671_v7 }
 0x4f9   :  { %v676_v19 = vadd.f32 1e-05, %v674_v12 }
 0x4fa   :  { %v673_v13 = vpop.xlane.xlu1 %672 }
 0x4fb   :  { %2087 = vrsqrt.f32 %v676_v19  ;;  %v675_v30 = vmul.f32 0.0078125, %v673_v13 }
 0x4fd   :  { %v677_v14 = vadd.f32 1e-05, %v675_v30 }
 0x4ff   :  { %2089 = vrsqrt.f32 %v677_v14 }
 0x505   :  { %v2088_v23 = vpop.eup %2087 }
 0x506   :  { %v680_v15 = vmul.f32 %v2088_v23, %v666_v1 }
 0x508   :  { %v688_v16 = vmul.f32 %v2766_v31, %v680_v15 }
 0x509   :  { %v2090_v17 = vpop.eup %2089 }
 0x50a   :  { %v2886_v18 = vadd.f32 %v2771_v32, %v688_v16  ;;  %v681_v20 = vmul.f32 %v2090_v17, %v667_v5 }
 0x50c   :  { %v689_v21 = vmul.f32 %v2766_v31, %v681_v20 }
 0x50e   :  { %v2890_v22 = vadd.f32 %v2771_v32, %v689_v21 }
 0x50f   :  { %2329 = dma.done.wait [#allocation6 + $0x2], 4096 }
 0x510   :  { %2330 = vsyncadd [#allocation6 + $0x2], 4294963200  ;;  %787 = vmatprep.mubr.bf16.mxu0 %v2373_v37  ;;  %830 = vmatprep.mubr.bf16.mxu1 %v2373_v37  ;;  %v703_v24 = vld [vmem:[#allocation4 + $0x8] sm:$0xff]  ;;  %v705_v25 = vld [vmem:[#allocation4 + $0x18] sm:$0xff]  ;;  %v701_v7 = vpack.c.bf16 %v2890_v22, %v2886_v18  ;;  %v749_v12 = vsub.s32 3, %v2853_v9  ;;  %v738_v19 = vrot.slane %v2776_v33, %v2856_v10  ;;  %v746_v13 = vrot.slane %v2776_v33, %v2866_v8 }
 0x511   :  { %v702_v26 = vld [vmem:[#allocation4] sm:$0xff]  ;;  %755 = vmatprep.subr.bf16.mxu0 %v703_v24  ;;  %798 = vmatprep.subr.bf16.mxu1 %v705_v25  ;;  %v704_v27 = vld [vmem:[#allocation4 + $0x10] sm:$0xff]  ;;  %v707_v28 = vld [vmem:[#allocation4 + $0x28] sm:$0xff]  ;;  %v742_v30 = vrot.slane %v2776_v33, %v2859_v11 }
 0x512   :  { %v709_v29 = vld [vmem:[#allocation4 + $0x38] sm:$0xff]  ;;  %756 = vmatpush1.bf16.msra.mxu0 %v702_v26  ;;  %799 = vmatpush1.bf16.msra.mxu1 %v704_v27  ;;  %v706_v31 = vld [vmem:[#allocation4 + $0x20] sm:$0xff]  ;;  %v708_v32 = vld [vmem:[#allocation4 + $0x30] sm:$0xff]  ;;  %v750_v14 = vrot.slane %v2776_v33, %v749_v12 }
 0x513   :  { %757 = vmatprep.subr.bf16.mxu0 %v707_v28  ;;  %800 = vmatprep.subr.bf16.mxu1 %v709_v29  ;;  %v711_v38 = vld [vmem:[#allocation4 + $0x48] sm:$0xff]  ;;  %v713_v39 = vld [vmem:[#allocation4 + $0x58] sm:$0xff]  ;;  %v710_v40 = vld [vmem:[#allocation4 + $0x40] sm:$0xff] }
 0x514   :  { %v712_v41 = vld [vmem:[#allocation4 + $0x50] sm:$0xff]  ;;  %v715_v42 = vld [vmem:[#allocation4 + $0x68] sm:$0xff]  ;;  %v717_v43 = vld [vmem:[#allocation4 + $0x78] sm:$0xff] }
 0x515   :  { %v714_v44 = vld [vmem:[#allocation4 + $0x60] sm:$0xff]  ;;  %v716_v45 = vld [vmem:[#allocation4 + $0x70] sm:$0xff]  ;;  %v719_v46 = vld [vmem:[#allocation4 + $0x88] sm:$0xff] }
 0x516   :  { %758 = vmatpush1.bf16.msra.mxu0 %v706_v31  ;;  %801 = vmatpush1.bf16.msra.mxu1 %v708_v32  ;;  %v721_v47 = vld [vmem:[#allocation4 + $0x98] sm:$0xff]  ;;  %v718_v48 = vld [vmem:[#allocation4 + $0x80] sm:$0xff]  ;;  %v720_v49 = vld [vmem:[#allocation4 + $0x90] sm:$0xff] }
 0x517   :  { %759 = vmatprep.subr.bf16.mxu0 %v711_v38  ;;  %802 = vmatprep.subr.bf16.mxu1 %v713_v39  ;;  %v723_v50 = vld [vmem:[#allocation4 + $0xa8] sm:$0xff]  ;;  %v725_v51 = vld [vmem:[#allocation4 + $0xb8] sm:$0xff]  ;;  %v722_v52 = vld [vmem:[#allocation4 + $0xa0] sm:$0xff] }
 0x518   :  { %v724_v53 = vld [vmem:[#allocation4 + $0xb0] sm:$0xff]  ;;  %v727_v55 = vld [vmem:[#allocation4 + $0xc8] sm:$0xff]  ;;  %v729_v0 = vld [vmem:[#allocation4 + $0xd8] sm:$0xff] }
 0x519   :  { %v726_v1 = vld [vmem:[#allocation4 + $0xc0] sm:$0xff]  ;;  %v728_v2 = vld [vmem:[#allocation4 + $0xd0] sm:$0xff]  ;;  %v731_v3 = vld [vmem:[#allocation4 + $0xe8] sm:$0xff] }
 0x51a   :  { %760 = vmatpush1.bf16.msra.mxu0 %v710_v40  ;;  %803 = vmatpush1.bf16.msra.mxu1 %v712_v41  ;;  %v733_v4 = vld [vmem:[#allocation4 + $0xf8] sm:$0xff]  ;;  %v730_v5 = vld [vmem:[#allocation4 + $0xe0] sm:$0xff]  ;;  %v732_v6 = vld [vmem:[#allocation4 + $0xf0] sm:$0xff] }
 0x51b   :  { %761 = vmatprep.subr.bf16.mxu0 %v715_v42  ;;  %804 = vmatprep.subr.bf16.mxu1 %v717_v43 }
 0x51e   :  { %762 = vmatpush1.bf16.msra.mxu0 %v714_v44  ;;  %805 = vmatpush1.bf16.msra.mxu1 %v716_v45 }
 0x51f   :  { %763 = vmatprep.subr.bf16.mxu0 %v719_v46  ;;  %806 = vmatprep.subr.bf16.mxu1 %v721_v47 }
 0x522   :  { %764 = vmatpush1.bf16.msra.mxu0 %v718_v48  ;;  %807 = vmatpush1.bf16.msra.mxu1 %v720_v49 }
 0x523   :  { %765 = vmatprep.subr.bf16.mxu0 %v723_v50  ;;  %808 = vmatprep.subr.bf16.mxu1 %v725_v51 }
 0x526   :  { %766 = vmatpush1.bf16.msra.mxu0 %v722_v52  ;;  %809 = vmatpush1.bf16.msra.mxu1 %v724_v53 }
 0x527   :  { %767 = vmatprep.subr.bf16.mxu0 %v727_v55  ;;  %810 = vmatprep.subr.bf16.mxu1 %v729_v0 }
 0x52a   :  { %768 = vmatpush1.bf16.msra.mxu0 %v726_v1  ;;  %811 = vmatpush1.bf16.msra.mxu1 %v728_v2 }
 0x52b   :  { %769 = vmatprep.subr.bf16.mxu0 %v731_v3  ;;  %812 = vmatprep.subr.bf16.mxu1 %v733_v4 }
 0x52e   :  { %770 = vmatpush1.bf16.msra.mxu0 %v730_v5  ;;  %813 = vmatpush1.bf16.msra.mxu1 %v732_v6 }
 0x531   :  { %788 = vmatmul.mubr.bf16.vlgmr.msra.gmra.mrb[8].mxu0 %v701_v7  ;;  %831 = vmatmul.mubr.bf16.vlgmr.msra.gmra.mrb[8].mxu1 %v701_v7 }
 0x604   :  { %v789_v23 = vpop.f32.mrb[8].mxu0  ;;  %v832_v15 = vpop.f32.mrb[8].mxu1 }
 0x605   :  { %v2906_v16 = vadd.f32 %v789_v23, %v738_v19  ;;  %v2908_v17 = vadd.f32 %v832_v15, %v746_v13  ;;  %v791_v20 = vpop.f32.mrb[9].mxu0  ;;  %v834_v21 = vpop.f32.mrb[9].mxu1 }
 0x606   :  { %v792_v24 = vadd.f32 %v791_v20, %v742_v30  ;;  %v835_v25 = vadd.f32 %v834_v21, %v750_v14  ;;  %v793_v26 = vpop.f32.mrb[10].mxu0  ;;  %v836_v27 = vpop.f32.mrb[10].mxu1 }
 0x607   :  { %v841_v28 = vmax.f32 %v2906_v16, 0.0  ;;  %v843_v29 = vmax.f32 %v2908_v17, 0.0  ;;  %v2912_v31 = vadd.f32 %v793_v26, %v738_v19  ;;  %v2914_v32 = vadd.f32 %v836_v27, %v746_v13  ;;  %v795_v33 = vpop.f32.mrb[11].mxu0  ;;  %v838_v38 = vpop.f32.mrb[11].mxu1 }
 0x608   :  { %v842_v39 = vmax.f32 %v792_v24, 0.0  ;;  %v844_v40 = vmax.f32 %v835_v25, 0.0  ;;  %v796_v41 = vadd.f32 %v795_v33, %v742_v30  ;;  %v839_v42 = vadd.f32 %v838_v38, %v750_v14 }
 0x609   :  { %v845_v43 = vmax.f32 %v2912_v31, 0.0  ;;  %v847_v44 = vmax.f32 %v2914_v32, 0.0 }
 0x60a   :  { %v846_v45 = vmax.f32 %v796_v41, 0.0  ;;  %v848_v46 = vmax.f32 %v839_v42, 0.0 }
 0x60b   :  { %2331 = dma.done.wait [#allocation6 + $0x3], 4096 }
 0x60c   :  { %2332 = vsyncadd [#allocation6 + $0x3], 4294963200  ;;  %v854_v47 = vpack.c.bf16 %v846_v45, %v842_v39  ;;  %v856_v48 = vpack.c.bf16 %v848_v46, %v844_v40  ;;  %v2921_v49 = vld [vmem:[%s3100_s9 + $0x3] sm:$0x7]  ;;  %v2926_v50 = vld [vmem:[%s3101_s10 + $0x1] ss:$0 sm:$0xff] }
 0x60d   :  { %v2931_v51 = vld [vmem:[%s3102_s11 + $0x1] ss:$0 sm:$0xff]  ;;  %v2941_v53 = vld [vmem:[%s3104_s13 + $0x4] sm:$0xf]  ;;  %v866_v6 = vld [vmem:[#allocation5 + $0x48] sm:$0xff] }
 0x60e   :  { %927 = vmatprep.mubr.bf16.mxu0 %v854_v47  ;;  %968 = vmatprep.mubr.bf16.mxu1 %v856_v48  ;;  %v2936_v52 = vld [vmem:[%s3103_s12 + $0x1] ss:$0 sm:$0xff]  ;;  %v882_v7 = vld [vmem:[#allocation5 + $0xc8] sm:$0xff]  ;;  %v867_v30 = vld [vmem:[#allocation5 + $0x50] sm:$0xff] }
 0x60f   :  { %v2946_v55 = vld [vmem:[%s3105_s14 + $0x1] ss:$0 sm:$0xff]  ;;  %v858_v19 = vld [vmem:[#allocation5 + $0x8] sm:$0xff]  ;;  %v883_v14 = vld [vmem:[#allocation5 + $0xd0] sm:$0xff] }
 0x610   :  { %v2951_v0 = vld [vmem:[%s3106_s15 + $0x1] ss:$0 sm:$0xff]  ;;  %v874_v13 = vld [vmem:[#allocation5 + $0x88] sm:$0xff]  ;;  %v859_v23 = vld [vmem:[#allocation5 + $0x10] sm:$0xff] }
 0x611   :  { %v2956_v1 = vld [vmem:[%s3142_s4 + $0x1] ss:$0 sm:$0xff]  ;;  %v875_v15 = vld [vmem:[#allocation5 + $0x90] sm:$0xff]  ;;  %v868_v20 = vld [vmem:[#allocation5 + $0x58] sm:$0xff] }
 0x612   :  { %v865_v2 = vld [vmem:[#allocation5 + $0x40] sm:$0xff]  ;;  %v884_v21 = vld [vmem:[#allocation5 + $0xd8] sm:$0xff]  ;;  %v870_v39 = vld [vmem:[#allocation5 + $0x68] sm:$0xff] }
 0x613   :  { %1805 = vmatprep.subr.bf16.mxu0 %v865_v2  ;;  %v881_v3 = vld [vmem:[#allocation5 + $0xc0] sm:$0xff]  ;;  %v860_v24 = vld [vmem:[#allocation5 + $0x18] sm:$0xff]  ;;  %v886_v40 = vld [vmem:[#allocation5 + $0xe8] sm:$0xff] }
 0x614   :  { %v857_v4 = vld [vmem:[#allocation5] sm:$0xff]  ;;  %1827 = vmatprep.subr.bf16.mxu1 %v881_v3  ;;  %v876_v25 = vld [vmem:[#allocation5 + $0x98] sm:$0xff]  ;;  %v862_v41 = vld [vmem:[#allocation5 + $0x28] sm:$0xff] }
 0x615   :  { %v873_v5 = vld [vmem:[#allocation5 + $0x80] sm:$0xff]  ;;  %1806 = vmatpush3.bf16.msra.mxu0 %v857_v4  ;;  %v878_v42 = vld [vmem:[#allocation5 + $0xa8] sm:$0xff]  ;;  %v871_v45 = vld [vmem:[#allocation5 + $0x70] sm:$0xff] }
 0x616   :  { %1828 = vmatpush3.bf16.msra.mxu1 %v873_v5  ;;  %1807 = vmatprep.subr.bf16.mxu0 %v866_v6  ;;  %v869_v26 = vld [vmem:[#allocation5 + $0x60] sm:$0xff]  ;;  %v887_v46 = vld [vmem:[#allocation5 + $0xf0] sm:$0xff]  ;;  %v872_v2 = vld [vmem:[#allocation5 + $0x78] sm:$0xff]  ;;  %v853_v6 = vpack.c.bf16 %v845_v43, %v841_v28 }
 0x617   :  { %1829 = vmatprep.subr.bf16.mxu1 %v882_v7  ;;  %v885_v27 = vld [vmem:[#allocation5 + $0xe0] sm:$0xff]  ;;  %v863_v47 = vld [vmem:[#allocation5 + $0x30] sm:$0xff]  ;;  %v888_v3 = vld [vmem:[#allocation5 + $0xf8] sm:$0xff]  ;;  %v855_v7 = vpack.c.bf16 %v847_v44, %v843_v29 }
 0x618   :  { %v861_v33 = vld [vmem:[#allocation5 + $0x20] sm:$0xff]  ;;  %v879_v48 = vld [vmem:[#allocation5 + $0xb0] sm:$0xff]  ;;  %v864_v4 = vld [vmem:[#allocation5 + $0x38] sm:$0xff] }
 0x619   :  { %1808 = vmatpush3.bf16.msra.mxu0 %v858_v19  ;;  %v877_v38 = vld [vmem:[#allocation5 + $0xa0] sm:$0xff]  ;;  %v880_v5 = vld [vmem:[#allocation5 + $0xb8] sm:$0xff] }
 0x61a   :  { %1830 = vmatpush3.bf16.msra.mxu1 %v874_v13  ;;  %1809 = vmatprep.subr.bf16.mxu0 %v867_v30 }
 0x61b   :  { %1831 = vmatprep.subr.bf16.mxu1 %v883_v14 }
 0x61d   :  { %1810 = vmatpush3.bf16.msra.mxu0 %v859_v23 }
 0x61e   :  { %1832 = vmatpush3.bf16.msra.mxu1 %v875_v15  ;;  %1811 = vmatprep.subr.bf16.mxu0 %v868_v20 }
 0x61f   :  { %1833 = vmatprep.subr.bf16.mxu1 %v884_v21 }
 0x621   :  { %1812 = vmatpush3.bf16.msra.mxu0 %v860_v24 }
 0x622   :  { %1834 = vmatpush3.bf16.msra.mxu1 %v876_v25  ;;  %1813 = vmatprep.subr.bf16.mxu0 %v869_v26 }
 0x623   :  { %1835 = vmatprep.subr.bf16.mxu1 %v885_v27 }
 0x625   :  { %1814 = vmatpush3.bf16.msra.mxu0 %v861_v33 }
 0x626   :  { %1836 = vmatpush3.bf16.msra.mxu1 %v877_v38  ;;  %1815 = vmatprep.subr.bf16.mxu0 %v870_v39 }
 0x627   :  { %1837 = vmatprep.subr.bf16.mxu1 %v886_v40 }
 0x629   :  { %1816 = vmatpush3.bf16.msra.mxu0 %v862_v41 }
 0x62a   :  { %1838 = vmatpush3.bf16.msra.mxu1 %v878_v42  ;;  %1817 = vmatprep.subr.bf16.mxu0 %v871_v45 }
 0x62b   :  { %1839 = vmatprep.subr.bf16.mxu1 %v887_v46 }
 0x62d   :  { %1818 = vmatpush3.bf16.msra.mxu0 %v863_v47 }
 0x62e   :  { %1840 = vmatpush3.bf16.msra.mxu1 %v879_v48  ;;  %1819 = vmatprep.subr.bf16.mxu0 %v872_v2 }
 0x62f   :  { %1841 = vmatprep.subr.bf16.mxu1 %v888_v3 }
 0x631   :  { %1820 = vmatpush3.bf16.msra.mxu0 %v864_v4 }
 0x632   :  { %1842 = vmatpush3.bf16.msra.mxu1 %v880_v5 }
 0x634   :  { %928 = vmatmul.mubr.bf16.vlgmr.msra.gmra.mrb[12].mxu0 %v853_v6 }
 0x635   :  { %969 = vmatmul.mubr.bf16.vlgmr.msra.gmra.mrb[12].mxu1 %v855_v7 }
 0x707   :  { %v1821_v19 = vpop.f32.mrb[12].mxu0 }
 0x708   :  { %v1843_v13 = vpop.f32.mrb[12].mxu1  ;;  %v1822_v30 = vpop.f32.mrb[13].mxu0 }
 0x709   :  { %v1823_v14 = vadd.f32 %v1822_v30, %v1821_v19  ;;  %v1844_v23 = vpop.f32.mrb[13].mxu1  ;;  %v1824_v15 = vpop.f32.mrb[14].mxu0 }
 0x70a   :  { %v1845_v20 = vadd.f32 %v1844_v23, %v1843_v13  ;;  %v1846_v16 = vpop.f32.mrb[14].mxu1  ;;  %v1825_v21 = vpop.f32.mrb[15].mxu0 }
 0x70b   :  { %v930_v28 = vadd.f32 %v1823_v14, %v2781_v34  ;;  %v1826_v31 = vadd.f32 %v1825_v21, %v1824_v15  ;;  %v1847_v43 = vpop.f32.mrb[15].mxu1 }
 0x70c   :  { %v1848_v17 = vadd.f32 %v1847_v43, %v1846_v16 }
 0x70d   :  { %v933_v32 = vadd.f32 %v1826_v31, %v2781_v34  ;;  %v971_v29 = vadd.f32 %v1845_v20, %v930_v28 }
 0x70f   :  { %v977_v44 = vadd.f32 %v971_v29, %v2886_v18  ;;  %v974_v24 = vadd.f32 %v1848_v17, %v933_v32 }
 0x711   :  { %979 = vadd.xlane.f32.xlu0 %v977_v44  ;;  %v978_v25 = vadd.f32 %v974_v24, %v2890_v22 }
 0x715   :  { %981 = vadd.xlane.f32.xlu0 %v978_v25 }
 0x79e   :  { %v980_v26 = vpop.xlane.xlu0 %979 }
 0x79f   :  { %v983_v27 = vmul.f32 0.0078125, %v980_v26 }
 0x7a1   :  { %v985_v33 = vsub.f32 %v977_v44, %v983_v27 }
 0x7a2   :  { %v982_v38 = vpop.xlane.xlu0 %981 }
 0x7a3   :  { %v984_v39 = vmul.f32 0.0078125, %v982_v38  ;;  %v987_v40 = vmul.f32 %v985_v33, %v985_v33 }
 0x7a5   :  { %v986_v41 = vsub.f32 %v978_v25, %v984_v39  ;;  %989 = vadd.xlane.f32.xlu1 %v987_v40 }
 0x7a7   :  { %v988_v42 = vmul.f32 %v986_v41, %v986_v41 }
 0x7a9   :  { %991 = vadd.xlane.f32.xlu1 %v988_v42 }
 0x832   :  { %v990_v45 = vpop.xlane.xlu1 %989 }
 0x833   :  { %v993_v34 = vmul.f32 0.0078125, %v990_v45 }
 0x835   :  { %v995_v46 = vadd.f32 1e-05, %v993_v34 }
 0x836   :  { %v992_v47 = vpop.xlane.xlu1 %991 }
 0x837   :  { %2091 = vrsqrt.f32 %v995_v46  ;;  %v994_v18 = vmul.f32 0.0078125, %v992_v47 }
 0x839   :  { %v996_v48 = vadd.f32 1e-05, %v994_v18 }
 0x83b   :  { %2093 = vrsqrt.f32 %v996_v48 }
 0x841   :  { %v2092_v22 = vpop.eup %2091 }
 0x842   :  { %v999_v2 = vmul.f32 %v2092_v22, %v985_v33 }
 0x844   :  { %v1007_v3 = vmul.f32 %v2786_v35, %v999_v2 }
 0x845   :  { %v2094_v4 = vpop.eup %2093 }
 0x846   :  { %v2972_v5 = vadd.f32 %v2791_v36, %v1007_v3  ;;  %v1000_v6 = vmul.f32 %v2094_v4, %v986_v41 }
 0x848   :  { %v1008_v7 = vmul.f32 %v2786_v35, %v1000_v6 }
 0x84a   :  { %v2976_v19 = vadd.f32 %v2791_v36, %v1008_v7 }
 0x84b   :  { %2333 = dma.done.wait [#allocation6 + $0x4], 3072 }
 0x84c   :  { %2334 = vsyncadd [#allocation6 + $0x4], 4294964224  ;;  %1108 = vmatprep.mubr.bf16.mxu0 %v2373_v37  ;;  %1981 = vmatprep.subr.bf16.mxu1 %v2374_v63  ;;  %v1037_v13 = vld [vmem:[#allocation2 + $0xc8] sm:$0xff]  ;;  %v1036_v30 = vld [vmem:[#allocation2 + $0xc0] sm:$0xff]  ;;  %v1035_v44 = vpack.c.bf16 %v2976_v19, %v2972_v5  ;;  %v1064_v24 = vrot.slane %v2921_v49, %v2856_v10  ;;  %v1068_v25 = vrot.slane %v2921_v49, %v2859_v11 }
 0x84d   :  { %1997 = vmatprep.mubr.msk.bf16.mxu1 %vm2375_vm0, %v2374_v63  ;;  %v1040_v14 = vld [vmem:[#allocation2 + $0xe0] sm:$0xff]  ;;  %1076 = vmatprep.subr.bf16.mxu0 %v1037_v13  ;;  %v1039_v23 = vld [vmem:[#allocation2 + $0xd8] sm:$0xff]  ;;  %v1042_v36 = vld [vmem:[#allocation2 + $0xf0] sm:$0xff] }
 0x84e   :  { %1077 = vmatpush1.bf16.msra.mxu0 %v1036_v30  ;;  %v1043_v35 = vld [vmem:[#allocation2 + $0xf8] sm:$0xff]  ;;  %v1046_v15 = vld [vmem:[#allocation2 + $0x110] sm:$0xff]  ;;  %v1045_v20 = vld [vmem:[#allocation2 + $0x108] sm:$0xff] }
 0x84f   :  { %1078 = vmatprep.subr.bf16.mxu0 %v1040_v14  ;;  %v1049_v16 = vld [vmem:[#allocation2 + $0x128] sm:$0xff]  ;;  %v1048_v21 = vld [vmem:[#allocation2 + $0x120] sm:$0xff]  ;;  %v1051_v31 = vld [vmem:[#allocation2 + $0x138] sm:$0xff] }
 0x850   :  { %v1052_v28 = vld [vmem:[#allocation2 + $0x140] sm:$0xff]  ;;  %v1055_v43 = vld [vmem:[#allocation2 + $0x158] sm:$0xff]  ;;  %v1054_v17 = vld [vmem:[#allocation2 + $0x150] sm:$0xff] }
 0x851   :  { %v1058_v32 = vld [vmem:[#allocation2 + $0x170] sm:$0xff]  ;;  %v1057_v29 = vld [vmem:[#allocation2 + $0x168] sm:$0xff] }
 0x852   :  { %1079 = vmatpush1.bf16.msra.mxu0 %v1039_v23 }
 0x853   :  { %1080 = vmatprep.subr.bf16.mxu0 %v1043_v35 }
 0x856   :  { %1081 = vmatpush1.bf16.msra.mxu0 %v1042_v36 }
 0x857   :  { %1082 = vmatprep.subr.bf16.mxu0 %v1046_v15 }
 0x85a   :  { %1083 = vmatpush1.bf16.msra.mxu0 %v1045_v20 }
 0x85b   :  { %1084 = vmatprep.subr.bf16.mxu0 %v1049_v16 }
 0x85e   :  { %1085 = vmatpush1.bf16.msra.mxu0 %v1048_v21 }
 0x85f   :  { %1086 = vmatprep.subr.bf16.mxu0 %v1052_v28 }
 0x862   :  { %1087 = vmatpush1.bf16.msra.mxu0 %v1051_v31 }
 0x863   :  { %1088 = vmatprep.subr.bf16.mxu0 %v1055_v43 }
 0x866   :  { %1089 = vmatpush1.bf16.msra.mxu0 %v1054_v17 }
 0x867   :  { %1090 = vmatprep.subr.bf16.mxu0 %v1058_v32 }
 0x86a   :  { %1091 = vmatpush1.bf16.msra.mxu0 %v1057_v29 }
 0x86b   :  { %2001 = vmatprep.subr.bf16.mxu0 %v2795_v54 }
 0x86d   :  { %1109 = vmatmul.mubr.bf16.vlgmr.msra.gmra.mrb[16].mxu0 %v1035_v44 }
 0x86e   :  { %2002 = vmatpush3.bf16.msra.mxu0 %v2795_v54  ;;  %v1038_v54 = vld [vmem:[#allocation2 + $0xd0] sm:$0xff] }
 0x86f   :  { %2003 = vmatprep.subr.bf16.mxu0 %v2802_v56  ;;  %1982 = vmatpush3.bf16.msra.mxu1 %v1038_v54 }
 0x870   :  { %1983 = vmatprep.subr.bf16.mxu1 %v2374_v63 }
 0x872   :  { %2004 = vmatpush3.bf16.msra.mxu0 %v2802_v56  ;;  %v1041_v56 = vld [vmem:[#allocation2 + $0xe8] sm:$0xff] }
 0x873   :  { %2005 = vmatprep.subr.bf16.mxu0 %v2808_v57  ;;  %1984 = vmatpush3.bf16.msra.mxu1 %v1041_v56  ;;  %v1072_v56 = vrot.slane %v2921_v49, %v2866_v8 }
 0x874   :  { %1985 = vmatprep.subr.bf16.mxu1 %v2374_v63 }
 0x876   :  { %2006 = vmatpush3.bf16.msra.mxu0 %v2808_v57  ;;  %v1044_v57 = vld [vmem:[#allocation2 + $0x100] sm:$0xff] }
 0x877   :  { %2007 = vmatprep.subr.bf16.mxu0 %v2814_v58  ;;  %1986 = vmatpush3.bf16.msra.mxu1 %v1044_v57 }
 0x878   :  { %1987 = vmatprep.subr.bf16.mxu1 %v2374_v63 }
 0x87a   :  { %2008 = vmatpush3.bf16.msra.mxu0 %v2814_v58  ;;  %v1047_v58 = vld [vmem:[#allocation2 + $0x118] sm:$0xff] }
 0x87b   :  { %2009 = vmatprep.subr.bf16.mxu0 %v2820_v59  ;;  %1988 = vmatpush3.bf16.msra.mxu1 %v1047_v58 }
 0x87c   :  { %1989 = vmatprep.subr.bf16.mxu1 %v2374_v63 }
 0x87e   :  { %2010 = vmatpush3.bf16.msra.mxu0 %v2820_v59  ;;  %v1050_v59 = vld [vmem:[#allocation2 + $0x130] sm:$0xff] }
 0x87f   :  { %2011 = vmatprep.subr.bf16.mxu0 %v2826_v60  ;;  %1990 = vmatpush3.bf16.msra.mxu1 %v1050_v59 }
 0x880   :  { %1991 = vmatprep.subr.bf16.mxu1 %v2374_v63 }
 0x882   :  { %2012 = vmatpush3.bf16.msra.mxu0 %v2826_v60  ;;  %v1053_v60 = vld [vmem:[#allocation2 + $0x148] sm:$0xff] }
 0x883   :  { %2013 = vmatprep.subr.bf16.mxu0 %v2833_v61  ;;  %1992 = vmatpush3.bf16.msra.mxu1 %v1053_v60 }
 0x884   :  { %1993 = vmatprep.subr.bf16.mxu1 %v2374_v63 }
 0x886   :  { %2014 = vmatpush3.bf16.msra.mxu0 %v2833_v61  ;;  %v1056_v61 = vld [vmem:[#allocation2 + $0x160] sm:$0xff] }
 0x887   :  { %2015 = vmatprep.subr.bf16.mxu0 %v2839_v62  ;;  %1994 = vmatpush3.bf16.msra.mxu1 %v1056_v61 }
 0x888   :  { %1995 = vmatprep.subr.bf16.mxu1 %v2374_v63 }
 0x88a   :  { %2016 = vmatpush3.bf16.msra.mxu0 %v2839_v62  ;;  %v1059_v62 = vld [vmem:[#allocation2 + $0x178] sm:$0xff] }
 0x88b   :  { %1996 = vmatpush3.bf16.msra.mxu1 %v1059_v62 }
 0x88e   :  { %1998 = vmatmul.mubr.bf16.vlgmr.msra.gmra.mrb[16].mxu1 %v1035_v44 }
 0x940   :  { %v1110_v26 = vpop.f32.mrb[16].mxu0 }
 0x941   :  { %v1111_v27 = vadd.f32 %v1110_v26, %v1064_v24  ;;  %v1112_v33 = vpop.f32.mrb[17].mxu0 }
 0x942   :  { %v1113_v38 = vadd.f32 %v1112_v33, %v1068_v25  ;;  %v1114_v39 = vpop.f32.mrb[18].mxu0 }
 0x943   :  { %v1115_v40 = vadd.f32 %v1114_v39, %v1064_v24  ;;  %v1116_v41 = vpop.f32.mrb[19].mxu0 }
 0x944   :  { %v1160_v42 = vmul.f32 %v1113_v38, %v1111_v27  ;;  %v1117_v45 = vadd.f32 %v1116_v41, %v1068_v25 }
 0x945   :  { %v1162_v34 = vmul.f32 %v1115_v40, %v1113_v38 }
 0x946   :  { %v1161_v46 = vmul.f32 %v1117_v45, %v1111_v27  ;;  %v1163_v47 = vmul.f32 %v1117_v45, %v1115_v40 }
 0x948   :  { %v1165_v18 = vpack.c.bf16 %v1163_v47, %v1162_v34  ;;  %v1164_v48 = vpack.c.bf16 %v1161_v46, %v1160_v42 }
 0x94a   :  { %2017 = vmatprep.mubr.bf16.mxu0 %v1164_v48 }
 0x94b   :  { %2018 = vmatmul.mubr.bf16.vlgmr.msra.gmra.mrb[20].mxu0 %v1165_v18 }
 0x961   :  { %v1153_v22 = vpop.f32.mrb[16].mxu1 }
 0x962   :  { %v1999_v2 = vpop.f32.mrb[17].mxu1  ;;  %v1154_v57 = vadd.f32 %v1153_v22, %v1072_v56 }
 0x963   :  { %v1156_v3 = vpop.f32.mrb[18].mxu1 }
 0x964   :  { %v2000_v4 = vpop.f32.mrb[19].mxu1  ;;  %v1157_v58 = vadd.f32 %v1156_v3, %v1072_v56 }
 0xa1e   :  { %v2019_v6 = vpop.f32.mrb[20].mxu0 }
 0xa1f   :  { %v1200_v7 = vpop.f32.mrb[21].mxu0 }
 0xa20   :  { %v2020_v13 = vpop.f32.mrb[22].mxu0 }
 0xa21   :  { %v1216_v30 = vmax.f32 %v2019_v6, %v2020_v13  ;;  %v1203_v14 = vpop.f32.mrb[23].mxu0 }
 0xa22   :  { %v1215_v23 = vmax.f32 %v1200_v7, %v1203_v14 }
 0xa23   :  { %v1219_v35 = vsub.f32 %v2019_v6, %v1216_v30  ;;  %v1220_v36 = vsub.f32 %v2020_v13, %v1216_v30 }
 0xa24   :  { %v1217_v15 = vsub.f32 %v1200_v7, %v1215_v23  ;;  %v1218_v20 = vsub.f32 %v1203_v14, %v1215_v23 }
 0xa25   :  { %v1225_v16 = vmul.f32 1.442695, %v1219_v35  ;;  %v1227_v21 = vmul.f32 1.442695, %v1220_v36 }
 0xa26   :  { %v1221_v28 = vmul.f32 1.442695, %v1217_v15  ;;  %v1223_v31 = vmul.f32 1.442695, %v1218_v20 }
 0xa27   :  { %2095 = vpow2.f32 %v1225_v16 }
 0xa28   :  { %2097 = vpow2.f32 %v1227_v21 }
 0xa29   :  { %2099 = vpow2.f32 %v1221_v28 }
 0xa2a   :  { %2101 = vpow2.f32 %v1223_v31 }
 0xa31   :  { %v2096_v43 = vpop.eup %2095 }
 0xa32   :  { %v2098_v17 = vpop.eup %2097 }
 0xa33   :  { %v2100_v32 = vpop.eup %2099  ;;  %v1230_v29 = vadd.f32 %v2098_v17, %v2096_v43 }
 0xa34   :  { %v2102_v44 = vpop.eup %2101 }
 0xa35   :  { %2103 = vrcp.f32 %v1230_v29  ;;  %v1229_v54 = vadd.f32 %v2102_v44, %v2100_v32 }
 0xa37   :  { %2105 = vrcp.f32 %v1229_v54 }
 0xa3f   :  { %v2104_v59 = vpop.eup %2103 }
 0xa40   :  { %v1235_v60 = vmul.f32 %v2104_v59, %v2096_v43  ;;  %v1236_v61 = vmul.f32 %v2104_v59, %v2098_v17 }
 0xa41   :  { %v2106_v62 = vpop.eup %2105 }
 0xa42   :  { %v1233_v24 = vmul.f32 %v2106_v62, %v2100_v32  ;;  %v1239_v25 = vmul.f32 %v1235_v60, %v1154_v57  ;;  %v1234_v26 = vmul.f32 %v2106_v62, %v2102_v44  ;;  %v1240_v27 = vmul.f32 %v1236_v61, %v1157_v58 }
 0xa44   :  { %v1237_v33 = vmul.f32 %v1233_v24, %v1154_v57  ;;  %v1238_v38 = vmul.f32 %v1234_v26, %v1157_v58  ;;  %v1242_v39 = vadd.f32 %v1240_v27, %v1239_v25 }
 0xa46   :  { %v1241_v40 = vadd.f32 %v1238_v38, %v1237_v33 }
 0xa47   :  { %2335 = dma.done.wait [#allocation6 + $0x5], 1024 }
 0xa48   :  { %2336 = vsyncadd [#allocation6 + $0x5], 4294966272  ;;  %2021 = vmatprep.subr.bf16.mxu1 %v2374_v63  ;;  %2037 = vmatprep.mubr.msk.bf16.mxu1 %vm2375_vm0, %v2374_v63  ;;  %v1246_v49 = vld [vmem:[#allocation3 + $0x40] sm:$0xff]  ;;  %v1247_v41 = vld [vmem:[#allocation3 + $0x48] sm:$0xff]  ;;  %v1245_v48 = vpack.c.bf16 %v1242_v39, %v1241_v40 }
 0xa49   :  { %2022 = vmatpush3.bf16.msra.mxu1 %v1246_v49  ;;  %v1248_v42 = vld [vmem:[#allocation3 + $0x50] sm:$0xff]  ;;  %v1249_v45 = vld [vmem:[#allocation3 + $0x58] sm:$0xff]  ;;  %v1250_v34 = vld [vmem:[#allocation3 + $0x60] sm:$0xff] }
 0xa4a   :  { %2023 = vmatprep.subr.bf16.mxu1 %v2374_v63  ;;  %v1251_v46 = vld [vmem:[#allocation3 + $0x68] sm:$0xff]  ;;  %v1252_v47 = vld [vmem:[#allocation3 + $0x70] sm:$0xff]  ;;  %v1253_v18 = vld [vmem:[#allocation3 + $0x78] sm:$0xff] }
 0xa4d   :  { %2024 = vmatpush3.bf16.msra.mxu1 %v1247_v41 }
 0xa4e   :  { %2025 = vmatprep.subr.bf16.mxu1 %v2374_v63 }
 0xa51   :  { %2026 = vmatpush3.bf16.msra.mxu1 %v1248_v42 }
 0xa52   :  { %2027 = vmatprep.subr.bf16.mxu1 %v2374_v63 }
 0xa55   :  { %2028 = vmatpush3.bf16.msra.mxu1 %v1249_v45 }
 0xa56   :  { %2029 = vmatprep.subr.bf16.mxu1 %v2374_v63 }
 0xa59   :  { %2030 = vmatpush3.bf16.msra.mxu1 %v1250_v34 }
 0xa5a   :  { %2031 = vmatprep.subr.bf16.mxu1 %v2374_v63 }
 0xa5d   :  { %2032 = vmatpush3.bf16.msra.mxu1 %v1251_v46 }
 0xa5e   :  { %2033 = vmatprep.subr.bf16.mxu1 %v2374_v63 }
 0xa61   :  { %2034 = vmatpush3.bf16.msra.mxu1 %v1252_v47 }
 0xa62   :  { %2035 = vmatprep.subr.bf16.mxu1 %v2374_v63 }
 0xa65   :  { %2036 = vmatpush3.bf16.msra.mxu1 %v1253_v18 }
 0xa68   :  { %2038 = vmatmul.mubr.bf16.vlgmr.msra.gmra.mrb[20].mxu1 %v1245_v48 }
 0xb3b   :  { %v1294_v22 = vpop.f32.mrb[20].mxu1 }
 0xb3c   :  { %v1295_v2 = vadd.f32 %v2926_v50, %v1294_v22  ;;  %v2039_v3 = vpop.f32.mrb[21].mxu1 }
 0xb3d   :  { %v1297_v4 = vpop.f32.mrb[22].mxu1 }
 0xb3e   :  { %v1301_v6 = vadd.f32 %v1295_v2, %v2972_v5  ;;  %v1298_v7 = vadd.f32 %v2926_v50, %v1297_v4  ;;  %v2040_v13 = vpop.f32.mrb[23].mxu1 }
 0xb40   :  { %1303 = vadd.xlane.f32.xlu0 %v1301_v6  ;;  %v1302_v30 = vadd.f32 %v1298_v7, %v2976_v19 }
 0xb44   :  { %1305 = vadd.xlane.f32.xlu0 %v1302_v30 }
 0xbcd   :  { %v1304_v14 = vpop.xlane.xlu0 %1303 }
 0xbce   :  { %v1307_v63 = vmul.f32 0.0078125, %v1304_v14 }
 0xbd0   :  { %v1309_v23 = vsub.f32 %v1301_v6, %v1307_v63 }
 0xbd1   :  { %v1306_v35 = vpop.xlane.xlu0 %1305 }
 0xbd2   :  { %v1308_v36 = vmul.f32 0.0078125, %v1306_v35  ;;  %v1311_v15 = vmul.f32 %v1309_v23, %v1309_v23 }
 0xbd4   :  { %v1310_v20 = vsub.f32 %v1302_v30, %v1308_v36  ;;  %1313 = vadd.xlane.f32.xlu1 %v1311_v15 }
 0xbd6   :  { %v1312_v16 = vmul.f32 %v1310_v20, %v1310_v20 }
 0xbd8   :  { %1315 = vadd.xlane.f32.xlu1 %v1312_v16 }
 0xc61   :  { %v1314_v21 = vpop.xlane.xlu1 %1313 }
 0xc62   :  { %v1317_v28 = vmul.f32 0.0078125, %v1314_v21 }
 0xc64   :  { %v1319_v5 = vadd.f32 1e-05, %v1317_v28 }
 0xc65   :  { %v1316_v31 = vpop.xlane.xlu1 %1315 }
 0xc66   :  { %2107 = vrsqrt.f32 %v1319_v5  ;;  %v1318_v50 = vmul.f32 0.0078125, %v1316_v31 }
 0xc68   :  { %v1320_v43 = vadd.f32 1e-05, %v1318_v50 }
 0xc6a   :  { %2109 = vrsqrt.f32 %v1320_v43 }
 0xc70   :  { %v2108_v19 = vpop.eup %2107 }
 0xc71   :  { %v1323_v17 = vmul.f32 %v2108_v19, %v1309_v23 }
 0xc73   :  { %v1331_v32 = vmul.f32 %v2931_v51, %v1323_v17 }
 0xc74   :  { %v2110_v29 = vpop.eup %2109 }
 0xc75   :  { %v3029_v44 = vadd.f32 %v2936_v52, %v1331_v32  ;;  %v1324_v54 = vmul.f32 %v2110_v29, %v1310_v20 }
 0xc77   :  { %v1332_v56 = vmul.f32 %v2931_v51, %v1324_v54 }
 0xc79   :  { %v3033_v57 = vadd.f32 %v2936_v52, %v1332_v56 }
 0xc7a   :  { %2337 = dma.done.wait [#allocation6 + $0x6], 4096 }
 0xc7b   :  { %2338 = vsyncadd [#allocation6 + $0x6], 4294963200  ;;  %1429 = vmatprep.mubr.bf16.mxu0 %v2373_v37  ;;  %1472 = vmatprep.mubr.bf16.mxu1 %v2373_v37  ;;  %v1345_v58 = vld [vmem:[#allocation4 + $0x108] sm:$0xff]  ;;  %v1347_v59 = vld [vmem:[#allocation4 + $0x118] sm:$0xff]  ;;  %v1343_v30 = vpack.c.bf16 %v3033_v57, %v3029_v44  ;;  %v1380_v14 = vrot.slane %v2941_v53, %v2856_v10  ;;  %v1388_v63 = vrot.slane %v2941_v53, %v2866_v8 }
 0xc7c   :  { %v1344_v60 = vld [vmem:[#allocation4 + $0x100] sm:$0xff]  ;;  %1397 = vmatprep.subr.bf16.mxu0 %v1345_v58  ;;  %1440 = vmatprep.subr.bf16.mxu1 %v1347_v59  ;;  %v1346_v61 = vld [vmem:[#allocation4 + $0x110] sm:$0xff]  ;;  %v1349_v62 = vld [vmem:[#allocation4 + $0x128] sm:$0xff]  ;;  %v1384_v23 = vrot.slane %v2941_v53, %v2859_v11  ;;  %v1392_v35 = vrot.slane %v2941_v53, %v749_v12 }
 0xc7d   :  { %v1351_v24 = vld [vmem:[#allocation4 + $0x138] sm:$0xff]  ;;  %1398 = vmatpush1.bf16.msra.mxu0 %v1344_v60  ;;  %1441 = vmatpush1.bf16.msra.mxu1 %v1346_v61  ;;  %v1348_v51 = vld [vmem:[#allocation4 + $0x120] sm:$0xff]  ;;  %v1350_v52 = vld [vmem:[#allocation4 + $0x130] sm:$0xff] }
 0xc7e   :  { %1399 = vmatprep.subr.bf16.mxu0 %v1349_v62  ;;  %1442 = vmatprep.subr.bf16.mxu1 %v1351_v24  ;;  %v1353_v25 = vld [vmem:[#allocation4 + $0x148] sm:$0xff]  ;;  %v1355_v26 = vld [vmem:[#allocation4 + $0x158] sm:$0xff]  ;;  %v1352_v37 = vld [vmem:[#allocation4 + $0x140] sm:$0xff] }
 0xc7f   :  { %v1354_v27 = vld [vmem:[#allocation4 + $0x150] sm:$0xff]  ;;  %v1357_v33 = vld [vmem:[#allocation4 + $0x168] sm:$0xff]  ;;  %v1359_v38 = vld [vmem:[#allocation4 + $0x178] sm:$0xff] }
 0xc80   :  { %v1356_v39 = vld [vmem:[#allocation4 + $0x160] sm:$0xff]  ;;  %v1358_v40 = vld [vmem:[#allocation4 + $0x170] sm:$0xff]  ;;  %v1361_v49 = vld [vmem:[#allocation4 + $0x188] sm:$0xff] }
 0xc81   :  { %1400 = vmatpush1.bf16.msra.mxu0 %v1348_v51  ;;  %1443 = vmatpush1.bf16.msra.mxu1 %v1350_v52  ;;  %v1363_v41 = vld [vmem:[#allocation4 + $0x198] sm:$0xff]  ;;  %v1360_v42 = vld [vmem:[#allocation4 + $0x180] sm:$0xff]  ;;  %v1362_v45 = vld [vmem:[#allocation4 + $0x190] sm:$0xff] }
 0xc82   :  { %1401 = vmatprep.subr.bf16.mxu0 %v1353_v25  ;;  %1444 = vmatprep.subr.bf16.mxu1 %v1355_v26  ;;  %v1365_v34 = vld [vmem:[#allocation4 + $0x1a8] sm:$0xff]  ;;  %v1367_v46 = vld [vmem:[#allocation4 + $0x1b8] sm:$0xff]  ;;  %v1364_v47 = vld [vmem:[#allocation4 + $0x1a0] sm:$0xff] }
 0xc83   :  { %v1366_v18 = vld [vmem:[#allocation4 + $0x1b0] sm:$0xff]  ;;  %v1369_v48 = vld [vmem:[#allocation4 + $0x1c8] sm:$0xff]  ;;  %v1371_v22 = vld [vmem:[#allocation4 + $0x1d8] sm:$0xff] }
 0xc84   :  { %v1368_v2 = vld [vmem:[#allocation4 + $0x1c0] sm:$0xff]  ;;  %v1370_v3 = vld [vmem:[#allocation4 + $0x1d0] sm:$0xff]  ;;  %v1373_v4 = vld [vmem:[#allocation4 + $0x1e8] sm:$0xff] }
 0xc85   :  { %1402 = vmatpush1.bf16.msra.mxu0 %v1352_v37  ;;  %1445 = vmatpush1.bf16.msra.mxu1 %v1354_v27  ;;  %v1375_v6 = vld [vmem:[#allocation4 + $0x1f8] sm:$0xff]  ;;  %v1372_v7 = vld [vmem:[#allocation4 + $0x1e0] sm:$0xff]  ;;  %v1374_v13 = vld [vmem:[#allocation4 + $0x1f0] sm:$0xff] }
 0xc86   :  { %1403 = vmatprep.subr.bf16.mxu0 %v1357_v33  ;;  %1446 = vmatprep.subr.bf16.mxu1 %v1359_v38 }
 0xc89   :  { %1404 = vmatpush1.bf16.msra.mxu0 %v1356_v39  ;;  %1447 = vmatpush1.bf16.msra.mxu1 %v1358_v40 }
 0xc8a   :  { %1405 = vmatprep.subr.bf16.mxu0 %v1361_v49  ;;  %1448 = vmatprep.subr.bf16.mxu1 %v1363_v41 }
 0xc8d   :  { %1406 = vmatpush1.bf16.msra.mxu0 %v1360_v42  ;;  %1449 = vmatpush1.bf16.msra.mxu1 %v1362_v45 }
 0xc8e   :  { %1407 = vmatprep.subr.bf16.mxu0 %v1365_v34  ;;  %1450 = vmatprep.subr.bf16.mxu1 %v1367_v46 }
 0xc91   :  { %1408 = vmatpush1.bf16.msra.mxu0 %v1364_v47  ;;  %1451 = vmatpush1.bf16.msra.mxu1 %v1366_v18 }
 0xc92   :  { %1409 = vmatprep.subr.bf16.mxu0 %v1369_v48  ;;  %1452 = vmatprep.subr.bf16.mxu1 %v1371_v22 }
 0xc95   :  { %1410 = vmatpush1.bf16.msra.mxu0 %v1368_v2  ;;  %1453 = vmatpush1.bf16.msra.mxu1 %v1370_v3 }
 0xc96   :  { %1411 = vmatprep.subr.bf16.mxu0 %v1373_v4  ;;  %1454 = vmatprep.subr.bf16.mxu1 %v1375_v6 }
 0xc99   :  { %1412 = vmatpush1.bf16.msra.mxu0 %v1372_v7  ;;  %1455 = vmatpush1.bf16.msra.mxu1 %v1374_v13 }
 0xc9c   :  { %1430 = vmatmul.mubr.bf16.vlgmr.msra.gmra.mrb[24].mxu0 %v1343_v30  ;;  %1473 = vmatmul.mubr.bf16.vlgmr.msra.gmra.mrb[24].mxu1 %v1343_v30 }
 0xd6f   :  { %v1431_v36 = vpop.f32.mrb[24].mxu0  ;;  %v1474_v15 = vpop.f32.mrb[24].mxu1 }
 0xd70   :  { %v3048_v20 = vadd.f32 %v1431_v36, %v1380_v14  ;;  %v3050_v16 = vadd.f32 %v1474_v15, %v1388_v63  ;;  %v1433_v21 = vpop.f32.mrb[25].mxu0  ;;  %v1476_v28 = vpop.f32.mrb[25].mxu1 }
 0xd71   :  { %v1434_v5 = vadd.f32 %v1433_v21, %v1384_v23  ;;  %v1477_v10 = vadd.f32 %v1476_v28, %v1392_v35  ;;  %v1435_v31 = vpop.f32.mrb[26].mxu0  ;;  %v1478_v50 = vpop.f32.mrb[26].mxu1 }
 0xd72   :  { %v1483_v8 = vmax.f32 %v3048_v20, 0.0  ;;  %v1485_v11 = vmax.f32 %v3050_v16, 0.0  ;;  %v3054_v43 = vadd.f32 %v1435_v31, %v1380_v14  ;;  %v3056_v9 = vadd.f32 %v1478_v50, %v1388_v63  ;;  %v1437_v12 = vpop.f32.mrb[27].mxu0  ;;  %v1480_v53 = vpop.f32.mrb[27].mxu1 }
 0xd73   :  { %v1484_v19 = vmax.f32 %v1434_v5, 0.0  ;;  %v1486_v17 = vmax.f32 %v1477_v10, 0.0  ;;  %v1438_v32 = vadd.f32 %v1437_v12, %v1384_v23  ;;  %v1481_v29 = vadd.f32 %v1480_v53, %v1392_v35 }
 0xd74   :  { %v1487_v54 = vmax.f32 %v3054_v43, 0.0  ;;  %v1489_v56 = vmax.f32 %v3056_v9, 0.0 }
 0xd75   :  { %v1488_v58 = vmax.f32 %v1438_v32, 0.0  ;;  %v1490_v59 = vmax.f32 %v1481_v29, 0.0 }
 0xd76   :  { %2339 = dma.done.wait [#allocation6 + $0x7], 4096 }
 0xd77   :  { %2340 = vsyncadd [#allocation6 + $0x7], 4294963200  ;;  %v1494_v60 = vpack.c.bf16 %v1488_v58, %v1484_v19  ;;  %v1496_v61 = vpack.c.bf16 %v1490_v59, %v1486_v17  ;;  %v1505_v62 = vld [vmem:[#allocation5 + $0x140] sm:$0xff]  ;;  %v1506_v25 = vld [vmem:[#allocation5 + $0x148] sm:$0xff]  ;;  %v1493_v35 = vpack.c.bf16 %v1487_v54, %v1483_v8  ;;  %v1495_v36 = vpack.c.bf16 %v1489_v56, %v1485_v11  ;;  %s2376_s12 = smov [#allocation15]  }
 0xd78   :  { %v1521_v24 = vld [vmem:[#allocation5 + $0x1c0] sm:$0xff]  ;;  %1877 = vmatprep.subr.bf16.mxu0 %v1505_v62  ;;  %v1522_v26 = vld [vmem:[#allocation5 + $0x1c8] sm:$0xff]  ;;  %v1507_v33 = vld [vmem:[#allocation5 + $0x150] sm:$0xff]  ;;  %s1664_s13 = sshll.u32 %s2376_s12, 4  ;;  %s1665_s13 = int_to_ptr.vmem [resolvable:$true] %s1664_s13 }
 0xd79   :  { %1567 = vmatprep.mubr.bf16.mxu0 %v1494_v60  ;;  %1608 = vmatprep.mubr.bf16.mxu1 %v1496_v61  ;;  %v1497_v51 = vld [vmem:[#allocation5 + $0x100] sm:$0xff]  ;;  %v1498_v37 = vld [vmem:[#allocation5 + $0x108] sm:$0xff]  ;;  %v1523_v38 = vld [vmem:[#allocation5 + $0x1d0] sm:$0xff]  ;;  %s2297_s14 = scalar_lea.vmem %s1665_s13, 256  ;;  %p2302_p2 = scmp.lt.s32.totalorder %s1665_s13, %s1665_s13 }
 0xd7a   :  { %1899 = vmatprep.subr.bf16.mxu1 %v1521_v24  ;;  %v1513_v52 = vld [vmem:[#allocation5 + $0x180] sm:$0xff]  ;;  %1878 = vmatpush3.bf16.msra.mxu0 %v1497_v51  ;;  %v1514_v27 = vld [vmem:[#allocation5 + $0x188] sm:$0xff]  ;;  %v1499_v39 = vld [vmem:[#allocation5 + $0x110] sm:$0xff]  ;;  %p2298_p1 = scmp.ne.s32.totalorder %s1665_s13, %s2297_s14  ;;  %p2303_p10 = scmp.lt.s32.totalorder %s2297_s14, %s2297_s14 }
 0xd7b   :  { %1900 = vmatpush3.bf16.msra.mxu1 %v1513_v52  ;;  %1879 = vmatprep.subr.bf16.mxu0 %v1506_v25  ;;  %v1515_v40 = vld [vmem:[#allocation5 + $0x190] sm:$0xff]  ;;  %v1508_v49 = vld [vmem:[#allocation5 + $0x158] sm:$0xff]  ;;  %v1509_v34 = vld [vmem:[#allocation5 + $0x160] sm:$0xff] }
 0xd7c   :  { %1901 = vmatprep.subr.bf16.mxu1 %v1522_v26  ;;  %v1524_v41 = vld [vmem:[#allocation5 + $0x1d8] sm:$0xff]  ;;  %v1525_v46 = vld [vmem:[#allocation5 + $0x1e0] sm:$0xff]  ;;  %v1510_v48 = vld [vmem:[#allocation5 + $0x168] sm:$0xff]  ;;  %p2304_p11 = por %p2303_p10, %p2302_p2 }
 0xd7d   :  { %v1500_v42 = vld [vmem:[#allocation5 + $0x118] sm:$0xff]  ;;  %v1501_v47 = vld [vmem:[#allocation5 + $0x120] sm:$0xff]  ;;  %v1526_v22 = vld [vmem:[#allocation5 + $0x1e8] sm:$0xff] }
 0xd7e   :  { %1880 = vmatpush3.bf16.msra.mxu0 %v1498_v37  ;;  %v1516_v45 = vld [vmem:[#allocation5 + $0x198] sm:$0xff]  ;;  %v1517_v18 = vld [vmem:[#allocation5 + $0x1a0] sm:$0xff]  ;;  %v1502_v2 = vld [vmem:[#allocation5 + $0x128] sm:$0xff]  ;;  %p2305_p5 = pnand %p2304_p11, %p2298_p1 }
 0xd7f   :  { %1902 = vmatpush3.bf16.msra.mxu1 %v1514_v27  ;;  %1881 = vmatprep.subr.bf16.mxu0 %v1507_v33  ;;  %v1518_v3 = vld [vmem:[#allocation5 + $0x1a8] sm:$0xff]  ;;  %v1511_v4 = vld [vmem:[#allocation5 + $0x170] sm:$0xff]  ;;  %v1512_v30 = vld [vmem:[#allocation5 + $0x178] sm:$0xff] }
 0xd80   :  { %1903 = vmatprep.subr.bf16.mxu1 %v1523_v38  ;;  %v1527_v6 = vld [vmem:[#allocation5 + $0x1f0] sm:$0xff]  ;;  %v1528_v14 = vld [vmem:[#allocation5 + $0x1f8] sm:$0xff] }
 0xd81   :  { %v1503_v7 = vld [vmem:[#allocation5 + $0x130] sm:$0xff]  ;;  %v1504_v63 = vld [vmem:[#allocation5 + $0x138] sm:$0xff] }
 0xd82   :  { %1882 = vmatpush3.bf16.msra.mxu0 %v1499_v39  ;;  %v1519_v13 = vld [vmem:[#allocation5 + $0x1b0] sm:$0xff]  ;;  %v1520_v23 = vld [vmem:[#allocation5 + $0x1b8] sm:$0xff] }
 0xd83   :  { %1904 = vmatpush3.bf16.msra.mxu1 %v1515_v40  ;;  %1883 = vmatprep.subr.bf16.mxu0 %v1508_v49 }
 0xd84   :  { %1905 = vmatprep.subr.bf16.mxu1 %v1524_v41 }
 0xd86   :  { %1884 = vmatpush3.bf16.msra.mxu0 %v1500_v42 }
 0xd87   :  { %1906 = vmatpush3.bf16.msra.mxu1 %v1516_v45  ;;  %1885 = vmatprep.subr.bf16.mxu0 %v1509_v34 }
 0xd88   :  { %1907 = vmatprep.subr.bf16.mxu1 %v1525_v46 }
 0xd8a   :  { %1886 = vmatpush3.bf16.msra.mxu0 %v1501_v47 }
 0xd8b   :  { %1908 = vmatpush3.bf16.msra.mxu1 %v1517_v18  ;;  %1887 = vmatprep.subr.bf16.mxu0 %v1510_v48 }
 0xd8c   :  { %1909 = vmatprep.subr.bf16.mxu1 %v1526_v22 }
 0xd8e   :  { %1888 = vmatpush3.bf16.msra.mxu0 %v1502_v2 }
 0xd8f   :  { %1910 = vmatpush3.bf16.msra.mxu1 %v1518_v3  ;;  %1889 = vmatprep.subr.bf16.mxu0 %v1511_v4 }
 0xd90   :  { %1911 = vmatprep.subr.bf16.mxu1 %v1527_v6 }
 0xd92   :  { %1890 = vmatpush3.bf16.msra.mxu0 %v1503_v7 }
 0xd93   :  { %1912 = vmatpush3.bf16.msra.mxu1 %v1519_v13  ;;  %1891 = vmatprep.subr.bf16.mxu0 %v1512_v30 }
 0xd94   :  { %1913 = vmatprep.subr.bf16.mxu1 %v1528_v14 }
 0xd96   :  { %1892 = vmatpush3.bf16.msra.mxu0 %v1504_v63 }
 0xd97   :  { %1914 = vmatpush3.bf16.msra.mxu1 %v1520_v23 }
 0xd99   :  { %1568 = vmatmul.mubr.bf16.vlgmr.msra.gmra.mrb[28].mxu0 %v1493_v35 }
 0xd9a   :  { %1609 = vmatmul.mubr.bf16.vlgmr.msra.gmra.mrb[28].mxu1 %v1495_v36 }
 0xe6c   :  { %v1893_v15 = vpop.f32.mrb[28].mxu0 }
 0xe6d   :  { %v1915_v21 = vpop.f32.mrb[28].mxu1  ;;  %v1894_v28 = vpop.f32.mrb[29].mxu0 }
 0xe6e   :  { %v1916_v5 = vpop.f32.mrb[29].mxu1  ;;  %v1895_v10 = vadd.f32 %v1894_v28, %v1893_v15  ;;  %v1896_v50 = vpop.f32.mrb[30].mxu0 }
 0xe6f   :  { %v1917_v31 = vadd.f32 %v1916_v5, %v1915_v21  ;;  %v1918_v20 = vpop.f32.mrb[30].mxu1  ;;  %v1897_v12 = vpop.f32.mrb[31].mxu0 }
 0xe70   :  { %v1919_v43 = vpop.f32.mrb[31].mxu1  ;;  %v1570_v8 = vadd.f32 %v1895_v10, %v2946_v55  ;;  %v1898_v16 = vadd.f32 %v1897_v12, %v1896_v50 }
 0xe71   :  { %v1920_v53 = vadd.f32 %v1919_v43, %v1918_v20 }
 0xe72   :  { %v1573_v11 = vadd.f32 %v1898_v16, %v2946_v55  ;;  %v1611_v9 = vadd.f32 %v1917_v31, %v1570_v8 }
 0xe74   :  { %v1617_v19 = vadd.f32 %v1611_v9, %v3029_v44  ;;  %v1614_v17 = vadd.f32 %v1920_v53, %v1573_v11 }
 0xe76   :  { %1619 = vadd.xlane.f32.xlu0 %v1617_v19  ;;  %v1618_v32 = vadd.f32 %v1614_v17, %v3033_v57 }
 0xe7a   :  { %1621 = vadd.xlane.f32.xlu0 %v1618_v32 }
 0xf03   :  { %v1620_v29 = vpop.xlane.xlu0 %1619 }
 0xf04   :  { %v1623_v54 = vmul.f32 0.0078125, %v1620_v29 }
 0xf06   :  { %v1625_v56 = vsub.f32 %v1617_v19, %v1623_v54 }
 0xf07   :  { %v1622_v58 = vpop.xlane.xlu0 %1621 }
 0xf08   :  { %v1624_v59 = vmul.f32 0.0078125, %v1622_v58  ;;  %v1627_v60 = vmul.f32 %v1625_v56, %v1625_v56 }
 0xf0a   :  { %v1626_v61 = vsub.f32 %v1618_v32, %v1624_v59  ;;  %1629 = vadd.xlane.f32.xlu1 %v1627_v60 }
 0xf0c   :  { %v1628_v62 = vmul.f32 %v1626_v61, %v1626_v61 }
 0xf0e   :  { %1631 = vadd.xlane.f32.xlu1 %v1628_v62 }
 0xf97   :  { %v1630_v24 = vpop.xlane.xlu1 %1629 }
 0xf98   :  { %v1633_v55 = vmul.f32 0.0078125, %v1630_v24 }
 0xf9a   :  { %v1635_v51 = vadd.f32 1e-05, %v1633_v55 }
 0xf9b   :  { %v1632_v52 = vpop.xlane.xlu1 %1631 }
 0xf9c   :  { %2111 = vrsqrt.f32 %v1635_v51  ;;  %v1634_v44 = vmul.f32 0.0078125, %v1632_v52 }
 0xf9e   :  { %v1636_v25 = vadd.f32 1e-05, %v1634_v44 }
 0xfa0   :  { %2113 = vrsqrt.f32 %v1636_v25 }
 0xfa6   :  { %v2112_v57 = vpop.eup %2111 }
 0xfa7   :  { %v1639_v26 = vmul.f32 %v2112_v57, %v1625_v56 }
 0xfa9   :  { %v1647_v37 = vmul.f32 %v2951_v0, %v1639_v26 }
 0xfaa   :  { %v2114_v27 = vpop.eup %2113 }
 0xfab   :  { %v1640_v33 = vmul.f32 %v2114_v27, %v1626_v61  ;;  %v1655_v38 = vadd.f32 %v2956_v1, %v1647_v37 }
 0xfad   :  { %v1648_v39 = vmul.f32 %v2951_v0, %v1640_v33  ;;  %1657 = vst [vmem:[#allocation15] sm:$0xff] %v1655_v38 }
 0xfaf   :  { %v1656_v40 = vadd.f32 %v2956_v1, %v1648_v39 }
 0xfb1   :  { %1658 = vst [vmem:[#allocation15 + $0x8] sm:$0xff] %v1656_v40 }
 0xfb2   :  { %2308 = shalt.err (!%p2305_p5)
}
 0xfb3   :  { %s3143_s17 = sld [smem:[#allocation49_spill]] }
 0xfb9   :  { %s2309_s23 = scalar_lea.hbm %s3143_s17, 256 }
 0xfba   :  { %p2310_p6 = scmp.ne.s32.totalorder %s3143_s17, %s2309_s23  ;;  %p2313_p12 = scmp.lt.u32.totalorder %s2309_s23, %s3143_s17 }
 0xfbc   :  { %p2315_p13 = pnand %p2313_p12, %p2310_p6 }
 0xfbe   :  { %2318 = shalt.err (!%p2315_p13)
}
 0xfbf   :  { %s3144_s29 = smov 8  }
 0xfc0   :  { %1670 = dma.vmem_to_hbm [thread:$0]  %s1665_s13, 256, %s3143_s17, [#allocation9], %s3137_s22, %s3137_s22, %s3144_s29  }
 0xfc1   :  { %2341 = dma.done.wait [#allocation9], 256  }
 0xfc2   :  { %2342 = vsyncadd [#allocation9], 4294967040 }
 0xfc3   :  { %1674 = vsyncpa [#allocation8], 1 }
 0xfc4   :  { %1675 = vsyncpa [#allocation11], 1 }
 0xfc5   :  { %1676 = vsyncpa [#allocation14], 1 }
 0xfc6   :  { %1677 = vsyncpa [#allocation9], 1 }
 0xfc7   :  { %1678 = vsyncmov [#allocation6] }
 0xfca   :  { %s1679_s27 = vpop.sfrf %1678 }
 0xfcb   :  { %p1769_p0 = scmp.ne.s32.totalorder %s1679_s27, 0 }
 0xfcd   :  { %1683 = shalt.err (%p1769_p0)  }
 0xfce   :  { %1685 = vsyncmov [#allocation6 + $0x1] }
 0xfd1   :  { %s1686_s5 = vpop.sfrf %1685 }
 0xfd2   :  { %p1770_p3 = scmp.ne.s32.totalorder %s1686_s5, 0 }
 0xfd4   :  { %1690 = shalt.err (%p1770_p3)  }
 0xfd5   :  { %1692 = vsyncmov [#allocation6 + $0x2] }
 0xfd8   :  { %s1693_s16 = vpop.sfrf %1692 }
 0xfd9   :  { %p1771_p4 = scmp.ne.s32.totalorder %s1693_s16, 0 }
 0xfdb   :  { %1697 = shalt.err (%p1771_p4)  }
 0xfdc   :  { %1699 = vsyncmov [#allocation6 + $0x3] }
 0xfdf   :  { %s1700_s22 = vpop.sfrf %1699 }
 0xfe0   :  { %p1772_p7 = scmp.ne.s32.totalorder %s1700_s22, 0 }
 0xfe2   :  { %1704 = shalt.err (%p1772_p7)  }
 0xfe3   :  { %1706 = vsyncmov [#allocation6 + $0x4] }
 0xfe6   :  { %s1707_s28 = vpop.sfrf %1706 }
 0xfe7   :  { %p1773_p8 = scmp.ne.s32.totalorder %s1707_s28, 0 }
 0xfe9   :  { %1711 = shalt.err (%p1773_p8)  }
 0xfea   :  { %1713 = vsyncmov [#allocation6 + $0x5] }
 0xfed   :  { %s1714_s8 = vpop.sfrf %1713 }
 0xfee   :  { %p1774_p9 = scmp.ne.s32.totalorder %s1714_s8, 0 }
 0xff0   :  { %1718 = shalt.err (%p1774_p9)  }
 0xff1   :  { %1720 = vsyncmov [#allocation6 + $0x6] }
 0xff4   :  { %s1721_s19 = vpop.sfrf %1720 }
 0xff5   :  { %p1775_p1 = scmp.ne.s32.totalorder %s1721_s19, 0 }
 0xff7   :  { %1725 = shalt.err (%p1775_p1)  }
 0xff8   :  { %1727 = vsyncmov [#allocation6 + $0x7] }
 0xffb   :  { %s1728_s3 = vpop.sfrf %1727 }
 0xffc   :  { %p1776_p2 = scmp.ne.s32.totalorder %s1728_s3, 0 }
 0xffe   :  { %1732 = shalt.err (%p1776_p2)  }

</bundles_post_ra>
